<compile_context>
chip_gen: v7x
topology: tpu7x:2x2x1
jax: 0.10.0
libtpu: 0.0.40
codegen_flags: <defaults>
</compile_context>

<pallas_src>
import functools

import jax
import jax.numpy as jnp
import numpy as np
from jax.experimental import pallas as pl
from jax.experimental.pallas import tpu as pltpu


def _round_up(v, m):
    return (v + m - 1) // m * m


def gru_kernel(x_ref, wi_ref, wh_ref, bi_ref, bh_ref, wfc_ref, bfc_ref,
               out_ref, h_ref, gx_ref, *, t_chunk, tb, hp):
    """One grid step = one batch block x one chunk of `t_chunk` timesteps.

    x_ref   : (t_chunk*tb, Ip) bf16  time-major rows for this batch block
    wi_ref  : (Ip, 3*Hp)       bf16  fused [r|z|n] input weights
    wh_ref  : (Hp, 3*Hp)       bf16  fused [r|z|n] hidden weights
    bi_ref  : (1, 3*Hp)        f32   fused input bias
    bh_ref  : (1, 3*Hp)        f32   fused hidden bias
    wfc_ref : (Hp, Op)         bf16  final Linear weight
    bfc_ref : (1, Op)          f32   final Linear bias
    out_ref : (tb, Op)         f32   resident output block (written once)
    h_ref   : (tb, Hp)         f32   VMEM-resident hidden state
    gx_ref  : (t_chunk*tb, 3*Hp) f32 staging buffer for the chunk projection
    """
    c = pl.program_id(1)

    @pl.when(c == 0)
    def _():
        h_ref[...] = jnp.zeros_like(h_ref)

    # --- Non-recurrent: input projection for the whole chunk in one matmul,
    #     staged through VMEM scratch (bounded live ranges in the loop below).
    gx_ref[...] = (jnp.dot(x_ref[...], wi_ref[...],
                           preferred_element_type=jnp.float32)
                   + bi_ref[...])                           # (t_chunk*tb, 3Hp)

    wh = wh_ref[...]
    bh = bh_ref[...]
    h = h_ref[...]                                          # (tb, Hp) f32

    # --- Recurrent: only h @ W_h on the serial critical path (unrolled).
    #     Static slices of the scratch ref are free views; each iteration only
    #     loads its own (tb, 3Hp) block.
    for s in range(t_chunk):
        gx = gx_ref[s * tb:(s + 1) * tb, :]                 # (tb, 3Hp)
        gh = (jnp.dot(h.astype(jnp.bfloat16), wh,
                      preferred_element_type=jnp.float32) + bh)  # (tb, 3Hp)
        rz = jax.nn.sigmoid(gx[:, :2 * hp] + gh[:, :2 * hp])     # fused r,z
        r = rz[:, :hp]
        z = rz[:, hp:]
        n = jnp.tanh(gx[:, 2 * hp:] + r * gh[:, 2 * hp:])
        h = (1.0 - z) * n + z * h

    h_ref[...] = h

    @pl.when(c == pl.num_programs(1) - 1)
    def _():
        out_ref[...] = (jnp.dot(h.astype(jnp.bfloat16), wfc_ref[...],
                                preferred_element_type=jnp.float32)
                        + bfc_ref[...]).astype(out_ref.dtype)


def _pad_gate_slab(w, h, hp):
    """Pad each gate block of a (..., 3*h) slab (gate order r,z,n) to width hp."""
    lead = w.shape[:-1]
    w3 = w.reshape(lead + (3, h))
    pad = [(0, 0)] * len(lead) + [(0, 0), (0, hp - h)]
    return jnp.pad(w3, pad).reshape(lead + (3 * hp,))


def gru_network_forward(x, params):
    """x: (B, T, I) float32.  Returns (B, O) float32 (GRU last step -> Linear)."""
    wi, wh, bi, bh, wfc, bfc = params
    B, T, I = x.shape
    H = wh.shape[0]
    O = wfc.shape[1]

    # Lane/sublane-friendly padded sizes (zero padding is semantics-preserving:
    # padded hidden dims stay exactly 0 through the recurrence).
    Bp = _round_up(max(B, 8), 8)
    Ip = _round_up(I, 128)
    Hp = _round_up(H, 128)
    Op = _round_up(O, 128)

    # Chunk several timesteps per grid step to amortize per-step grid overhead;
    # t_chunk * tb rows of (Ip + 3*Hp) f32 must stay well inside VMEM.
    t_chunk = next(c for c in (32, 16, 8, 4, 2, 1) if T % c == 0)
    tb = next(t for t in (128, 64, 32, 16, 8) if Bp % t == 0)
    n_bb = Bp // tb
    n_tc = T // t_chunk

    # ---- parameters: fused [r|z|n] slabs, per-gate padded to Hp, bf16 weights.
    wi_p = jnp.pad(_pad_gate_slab(wi, H, Hp),
                   ((0, Ip - I), (0, 0))).astype(jnp.bfloat16)      # (Ip, 3Hp)
    wh_p = jnp.pad(_pad_gate_slab(wh, H, Hp),
                   ((0, Hp - H), (0, 0))).astype(jnp.bfloat16)      # (Hp, 3Hp)
    bi_p = _pad_gate_slab(bi.reshape(1, -1), H, Hp)                 # (1, 3Hp)
    bh_p = _pad_gate_slab(bh.reshape(1, -1), H, Hp)                 # (1, 3Hp)
    wfc_p = jnp.pad(wfc, ((0, Hp - H), (0, Op - O))).astype(jnp.bfloat16)
    bfc_p = jnp.pad(bfc.reshape(1, -1), ((0, 0), (0, Op - O)))      # (1, Op)

    # ---- input: (B,T,I) -> time-major, padded, grouped per batch block:
    #      (n_bb, T*tb, Ip) with rows time-major within each batch block.
    x_tbi = jnp.transpose(x, (1, 0, 2))                             # (T, B, I)
    x_pad = jnp.pad(x_tbi, ((0, 0), (0, Bp - B), (0, Ip - I)))
    x_blk = (x_pad.reshape(T, n_bb, tb, Ip)
             .transpose(1, 0, 2, 3)
             .reshape(n_bb, T * tb, Ip)
             .astype(jnp.bfloat16))

    kernel = functools.partial(gru_kernel, t_chunk=t_chunk, tb=tb, hp=Hp)

    # TODO(synk): for very large H on v7x (64 MiB VMEM), mark the constant
    # weight specs below with pipeline_mode=pl.Buffered(1) to single-buffer them.
    grid_spec = pltpu.PrefetchScalarGridSpec(
        num_scalar_prefetch=0,
        grid=(n_bb, n_tc),
        in_specs=[
            pl.BlockSpec((pl.Squeezed(), t_chunk * tb, Ip),
                         lambda b, c: (b, c, 0)),                   # x chunk
            pl.BlockSpec((Ip, 3 * Hp), lambda b, c: (0, 0)),        # W_i
            pl.BlockSpec((Hp, 3 * Hp), lambda b, c: (0, 0)),        # W_h
            pl.BlockSpec((1, 3 * Hp), lambda b, c: (0, 0)),         # b_i
            pl.BlockSpec((1, 3 * Hp), lambda b, c: (0, 0)),         # b_h
            pl.BlockSpec((Hp, Op), lambda b, c: (0, 0)),            # W_fc
            pl.BlockSpec((1, Op), lambda b, c: (0, 0)),             # b_fc
        ],
        out_specs=pl.BlockSpec((tb, Op), lambda b, c: (b, 0)),
        scratch_shapes=[
            pltpu.VMEM((tb, Hp), jnp.float32),                      # hidden h
            pltpu.VMEM((t_chunk * tb, 3 * Hp), jnp.float32),        # gx staging
        ],
    )

    out_pad = pl.pallas_call(
        kernel,
        out_shape=jax.ShapeDtypeStruct((Bp, Op), jnp.float32),
        grid_spec=grid_spec,
        compiler_params=pltpu.CompilerParams(
            dimension_semantics=("parallel", "arbitrary")),
    )(x_blk, wi_p, wh_p, bi_p, bh_p, wfc_p, bfc_p)

    return out_pad[:B, :O]


def init_params(key, input_size, hidden_size, output_size):
    """Deterministic synthetic parameters, fused-gate layout [r|z|n]."""
    k = jax.random.split(key, 6)
    s = 1.0 / np.sqrt(hidden_size)
    wi = jax.random.uniform(k[0], (input_size, 3 * hidden_size), jnp.float32, -s, s)
    wh = jax.random.uniform(k[1], (hidden_size, 3 * hidden_size), jnp.float32, -s, s)
    bi = jax.random.uniform(k[2], (3 * hidden_size,), jnp.float32, -s, s)
    bh = jax.random.uniform(k[3], (3 * hidden_size,), jnp.float32, -s, s)
    wfc = jax.random.uniform(k[4], (hidden_size, output_size), jnp.float32, -s, s)
    bfc = jax.random.uniform(k[5], (output_size,), jnp.float32, -s, s)
    return (wi, wh, bi, bh, wfc, bfc)


def reference_forward(x, params):
    """Pure-JAX f32 reference matching torch.nn.GRU(batch_first=True) + Linear."""
    wi, wh, bi, bh, wfc, bfc = params
    B, T, I = x.shape
    H = wh.shape[0]
    h0 = jnp.zeros((B, H), jnp.float32)

    def step(h, x_t):
        gx = x_t @ wi + bi
        gh = h @ wh + bh
        r = jax.nn.sigmoid(gx[:, :H] + gh[:, :H])
        z = jax.nn.sigmoid(gx[:, H:2 * H] + gh[:, H:2 * H])
        n = jnp.tanh(gx[:, 2 * H:] + r * gh[:, 2 * H:])
        return (1.0 - z) * n + z * h, None

    h_final, _ = jax.lax.scan(step, h0, jnp.transpose(x, (1, 0, 2)))
    return h_final @ wfc + bfc


if __name__ == "__main__":
    B, T, I, H, O = 2, 8, 16, 32, 8   # batch, seq, input, hidden, output

    key = jax.random.PRNGKey(0)
    kx, kp = jax.random.split(key)
    x = jax.random.normal(kx, (B, T, I), jnp.float32)
    params = init_params(kp, I, H, O)

    out = jax.block_until_ready(gru_network_forward(x, params))
    ref = jax.block_until_ready(reference_forward(x, params))

    # bf16 matmul inputs with f32 accumulation -> slightly looser tolerance.
    np.testing.assert_allclose(np.asarray(out), np.asarray(ref),
                               rtol=2e-2, atol=2e-2)

    print("KERNEL_OK")
</pallas_src>

<mosaic_0001>
module attributes {stable_mosaic.version = 11 : i64} {
  func.func @gru_kernel(%arg0: i32, %arg1: i32, %arg2: memref<1x64x128xbf16, #tpu.memory_space<vmem>>, %arg3: memref<128x384xbf16, #tpu.memory_space<vmem>>, %arg4: memref<128x384xbf16, #tpu.memory_space<vmem>>, %arg5: memref<1x384xf32, #tpu.memory_space<vmem>>, %arg6: memref<1x384xf32, #tpu.memory_space<vmem>>, %arg7: memref<128x128xbf16, #tpu.memory_space<vmem>>, %arg8: memref<1x128xf32, #tpu.memory_space<vmem>>, %arg9: memref<8x128xf32, #tpu.memory_space<vmem>>, %arg10: memref<8x128xf32, #tpu.memory_space<vmem>>, %arg11: memref<64x384xf32, #tpu.memory_space<vmem>>) attributes {dimension_semantics = [#tpu.dimension_semantics<parallel>, #tpu.dimension_semantics<arbitrary>], iteration_bounds = array<i64: 1, 1>, scalar_prefetch = 0 : i64, scratch_operands = 2 : i64, tpu.core_type = #tpu.core_type<tc>, window_params = [{transform_indices = @transform_0, window_bounds = array<i64: 1, 64, 128>}, {pipeline_mode = #tpu.pipeline_mode<synchronous>, transform_indices = @transform_1, window_bounds = array<i64: 128, 384>}, {pipeline_mode = #tpu.pipeline_mode<synchronous>, transform_indices = @transform_2, window_bounds = array<i64: 128, 384>}, {pipeline_mode = #tpu.pipeline_mode<synchronous>, transform_indices = @transform_3, window_bounds = array<i64: 1, 384>}, {pipeline_mode = #tpu.pipeline_mode<synchronous>, transform_indices = @transform_4, window_bounds = array<i64: 1, 384>}, {pipeline_mode = #tpu.pipeline_mode<synchronous>, transform_indices = @transform_5, window_bounds = array<i64: 128, 128>}, {pipeline_mode = #tpu.pipeline_mode<synchronous>, transform_indices = @transform_6, window_bounds = array<i64: 1, 128>}, {transform_indices = @transform_7, window_bounds = array<i64: 8, 128>}]} {
    %c0_i32 = arith.constant 0 : i32
    %0 = arith.cmpi eq, %arg1, %c0_i32 : i32
    %1 = arith.extui %0 : i1 to i32
    %c0_i32_0 = arith.constant 0 : i32
    %2 = arith.cmpi ne, %1, %c0_i32_0 : i32
    scf.if %2 {
      %cst_52 = arith.constant 0.000000e+00 : f32
      %218 = vector.broadcast %cst_52 : f32 to vector<8x128xf32>
      %c0_53 = arith.constant 0 : index
      %c0_54 = arith.constant 0 : index
      %219 = vector.load %arg10[%c0_53, %c0_54] : memref<8x128xf32, #tpu.memory_space<vmem>>, vector<8x128xf32>
      tpu.vector_store %arg10[%c0_53, %c0_54], %218 {strides = array<i32>} : memref<8x128xf32, #tpu.memory_space<vmem>>, vector<8x128xf32>,
    } else {
    }
    %c0 = arith.constant 0 : index
    %c0_1 = arith.constant 0 : index
    %c0_2 = arith.constant 0 : index
    %3 = vector.load %arg2[%c0, %c0_1, %c0_2] : memref<1x64x128xbf16, #tpu.memory_space<vmem>>, vector<1x64x128xbf16>
    %4 = vector.shape_cast %3 : vector<1x64x128xbf16> to vector<64x128xbf16>
    %c0_3 = arith.constant 0 : index
    %c0_4 = arith.constant 0 : index
    %5 = vector.load %arg3[%c0_3, %c0_4] : memref<128x384xbf16, #tpu.memory_space<vmem>>, vector<128x384xbf16>
    %cst = arith.constant dense<0.000000e+00> : vector<64x384xf32>
    %6 = tpu.matmul %4, %5, %cst {dimension_numbers = #tpu.dot_dimension_numbers<[1], [0], [0], [1], [0, 0, 1, 1], [], []>} : vector<64x128xbf16>, vector<128x384xbf16>, vector<64x384xf32> -> vector<64x384xf32>
    %c0_5 = arith.constant 0 : index
    %c0_6 = arith.constant 0 : index
    %7 = vector.load %arg5[%c0_5, %c0_6] : memref<1x384xf32, #tpu.memory_space<vmem>>, vector<1x384xf32>
    %8 = vector.broadcast %7 : vector<1x384xf32> to vector<64x384xf32>
    %9 = arith.addf %6, %8 : vector<64x384xf32>
    %c0_7 = arith.constant 0 : index
    %c0_8 = arith.constant 0 : index
    %10 = vector.load %arg11[%c0_7, %c0_8] : memref<64x384xf32, #tpu.memory_space<vmem>>, vector<64x384xf32>
    tpu.vector_store %arg11[%c0_7, %c0_8], %9 {strides = array<i32>} : memref<64x384xf32, #tpu.memory_space<vmem>>, vector<64x384xf32>,
    %c0_9 = arith.constant 0 : index
    %c0_10 = arith.constant 0 : index
    %11 = vector.load %arg4[%c0_9, %c0_10] : memref<128x384xbf16, #tpu.memory_space<vmem>>, vector<128x384xbf16>
    %c0_11 = arith.constant 0 : index
    %c0_12 = arith.constant 0 : index
    %12 = vector.load %arg6[%c0_11, %c0_12] : memref<1x384xf32, #tpu.memory_space<vmem>>, vector<1x384xf32>
    %c0_13 = arith.constant 0 : index
    %c0_14 = arith.constant 0 : index
    %13 = vector.load %arg10[%c0_13, %c0_14] : memref<8x128xf32, #tpu.memory_space<vmem>>, vector<8x128xf32>
    %c0_15 = arith.constant 0 : index
    %c0_16 = arith.constant 0 : index
    %14 = vector.load %arg11[%c0_15, %c0_16] : memref<64x384xf32, #tpu.memory_space<vmem>>, vector<8x384xf32>
    %15 = arith.truncf %13 : vector<8x128xf32> to vector<8x128xbf16>
    %cst_17 = arith.constant dense<0.000000e+00> : vector<8x384xf32>
    %16 = tpu.matmul %15, %11, %cst_17 {dimension_numbers = #tpu.dot_dimension_numbers<[1], [0], [0], [1], [0, 0, 1, 1], [], []>} : vector<8x128xbf16>, vector<128x384xbf16>, vector<8x384xf32> -> vector<8x384xf32>
    %17 = vector.broadcast %12 : vector<1x384xf32> to vector<8x384xf32>
    %18 = arith.addf %16, %17 : vector<8x384xf32>
    %19 = vector.extract_strided_slice %14 {offsets = [0, 0], sizes = [8, 256], strides = [1, 1]} : vector<8x384xf32> to vector<8x256xf32>
    %20 = vector.extract_strided_slice %18 {offsets = [0, 0], sizes = [8, 256], strides = [1, 1]} : vector<8x384xf32> to vector<8x256xf32>
    %21 = arith.addf %19, %20 : vector<8x256xf32>
    %22 = arith.negf %21 : vector<8x256xf32>
    %23 = math.exp %22 : vector<8x256xf32>
    %cst_18 = arith.constant 1.000000e+00 : f32
    %24 = vector.broadcast %cst_18 : f32 to vector<8x256xf32>
    %25 = arith.addf %24, %23 : vector<8x256xf32>
    %26 = arith.divf %24, %25 : vector<8x256xf32>
    %27 = vector.extract_strided_slice %26 {offsets = [0, 0], sizes = [8, 128], strides = [1, 1]} : vector<8x256xf32> to vector<8x128xf32>
    %28 = vector.extract_strided_slice %26 {offsets = [0, 128], sizes = [8, 128], strides = [1, 1]} : vector<8x256xf32> to vector<8x128xf32>
    %29 = vector.extract_strided_slice %14 {offsets = [0, 256], sizes = [8, 128], strides = [1, 1]} : vector<8x384xf32> to vector<8x128xf32>
    %30 = vector.extract_strided_slice %18 {offsets = [0, 256], sizes = [8, 128], strides = [1, 1]} : vector<8x384xf32> to vector<8x128xf32>
    %31 = arith.mulf %27, %30 : vector<8x128xf32>
    %32 = arith.addf %29, %31 : vector<8x128xf32>
    %33 = math.tanh %32 : vector<8x128xf32>
    %cst_19 = arith.constant 1.000000e+00 : f32
    %34 = vector.broadcast %cst_19 : f32 to vector<8x128xf32>
    %35 = arith.subf %34, %28 : vector<8x128xf32>
    %36 = arith.mulf %35, %33 : vector<8x128xf32>
    %37 = arith.mulf %28, %13 : vector<8x128xf32>
    %38 = arith.addf %36, %37 : vector<8x128xf32>
    %c8 = arith.constant 8 : index
    %c0_20 = arith.constant 0 : index
    %39 = vector.load %arg11[%c8, %c0_20] : memref<64x384xf32, #tpu.memory_space<vmem>>, vector<8x384xf32>
    %40 = arith.truncf %38 : vector<8x128xf32> to vector<8x128xbf16>
    %cst_21 = arith.constant dense<0.000000e+00> : vector<8x384xf32>
    %41 = tpu.matmul %40, %11, %cst_21 {dimension_numbers = #tpu.dot_dimension_numbers<[1], [0], [0], [1], [0, 0, 1, 1], [], []>} : vector<8x128xbf16>, vector<128x384xbf16>, vector<8x384xf32> -> vector<8x384xf32>
    %42 = vector.broadcast %12 : vector<1x384xf32> to vector<8x384xf32>
    %43 = arith.addf %41, %42 : vector<8x384xf32>
    %44 = vector.extract_strided_slice %39 {offsets = [0, 0], sizes = [8, 256], strides = [1, 1]} : vector<8x384xf32> to vector<8x256xf32>
    %45 = vector.extract_strided_slice %43 {offsets = [0, 0], sizes = [8, 256], strides = [1, 1]} : vector<8x384xf32> to vector<8x256xf32>
    %46 = arith.addf %44, %45 : vector<8x256xf32>
    %47 = arith.negf %46 : vector<8x256xf32>
    %48 = math.exp %47 : vector<8x256xf32>
    %cst_22 = arith.constant 1.000000e+00 : f32
    %49 = vector.broadcast %cst_22 : f32 to vector<8x256xf32>
    %50 = arith.addf %49, %48 : vector<8x256xf32>
    %51 = arith.divf %49, %50 : vector<8x256xf32>
    %52 = vector.extract_strided_slice %51 {offsets = [0, 0], sizes = [8, 128], strides = [1, 1]} : vector<8x256xf32> to vector<8x128xf32>
    %53 = vector.extract_strided_slice %51 {offsets = [0, 128], sizes = [8, 128], strides = [1, 1]} : vector<8x256xf32> to vector<8x128xf32>
    %54 = vector.extract_strided_slice %39 {offsets = [0, 256], sizes = [8, 128], strides = [1, 1]} : vector<8x384xf32> to vector<8x128xf32>
    %55 = vector.extract_strided_slice %43 {offsets = [0, 256], sizes = [8, 128], strides = [1, 1]} : vector<8x384xf32> to vector<8x128xf32>
    %56 = arith.mulf %52, %55 : vector<8x128xf32>
    %57 = arith.addf %54, %56 : vector<8x128xf32>
    %58 = math.tanh %57 : vector<8x128xf32>
    %cst_23 = arith.constant 1.000000e+00 : f32
    %59 = vector.broadcast %cst_23 : f32 to vector<8x128xf32>
    %60 = arith.subf %59, %53 : vector<8x128xf32>
    %61 = arith.mulf %60, %58 : vector<8x128xf32>
    %62 = arith.mulf %53, %38 : vector<8x128xf32>
    %63 = arith.addf %61, %62 : vector<8x128xf32>
    %c16 = arith.constant 16 : index
    %c0_24 = arith.constant 0 : index
    %64 = vector.load %arg11[%c16, %c0_24] : memref<64x384xf32, #tpu.memory_space<vmem>>, vector<8x384xf32>
    %65 = arith.truncf %63 : vector<8x128xf32> to vector<8x128xbf16>
    %cst_25 = arith.constant dense<0.000000e+00> : vector<8x384xf32>
    %66 = tpu.matmul %65, %11, %cst_25 {dimension_numbers = #tpu.dot_dimension_numbers<[1], [0], [0], [1], [0, 0, 1, 1], [], []>} : vector<8x128xbf16>, vector<128x384xbf16>, vector<8x384xf32> -> vector<8x384xf32>
    %67 = vector.broadcast %12 : vector<1x384xf32> to vector<8x384xf32>
    %68 = arith.addf %66, %67 : vector<8x384xf32>
    %69 = vector.extract_strided_slice %64 {offsets = [0, 0], sizes = [8, 256], strides = [1, 1]} : vector<8x384xf32> to vector<8x256xf32>
    %70 = vector.extract_strided_slice %68 {offsets = [0, 0], sizes = [8, 256], strides = [1, 1]} : vector<8x384xf32> to vector<8x256xf32>
    %71 = arith.addf %69, %70 : vector<8x256xf32>
    %72 = arith.negf %71 : vector<8x256xf32>
    %73 = math.exp %72 : vector<8x256xf32>
    %cst_26 = arith.constant 1.000000e+00 : f32
    %74 = vector.broadcast %cst_26 : f32 to vector<8x256xf32>
    %75 = arith.addf %74, %73 : vector<8x256xf32>
    %76 = arith.divf %74, %75 : vector<8x256xf32>
    %77 = vector.extract_strided_slice %76 {offsets = [0, 0], sizes = [8, 128], strides = [1, 1]} : vector<8x256xf32> to vector<8x128xf32>
    %78 = vector.extract_strided_slice %76 {offsets = [0, 128], sizes = [8, 128], strides = [1, 1]} : vector<8x256xf32> to vector<8x128xf32>
    %79 = vector.extract_strided_slice %64 {offsets = [0, 256], sizes = [8, 128], strides = [1, 1]} : vector<8x384xf32> to vector<8x128xf32>
    %80 = vector.extract_strided_slice %68 {offsets = [0, 256], sizes = [8, 128], strides = [1, 1]} : vector<8x384xf32> to vector<8x128xf32>
    %81 = arith.mulf %77, %80 : vector<8x128xf32>
    %82 = arith.addf %79, %81 : vector<8x128xf32>
    %83 = math.tanh %82 : vector<8x128xf32>
    %cst_27 = arith.constant 1.000000e+00 : f32
    %84 = vector.broadcast %cst_27 : f32 to vector<8x128xf32>
    %85 = arith.subf %84, %78 : vector<8x128xf32>
    %86 = arith.mulf %85, %83 : vector<8x128xf32>
    %87 = arith.mulf %78, %63 : vector<8x128xf32>
    %88 = arith.addf %86, %87 : vector<8x128xf32>
    %c24 = arith.constant 24 : index
    %c0_28 = arith.constant 0 : index
    %89 = vector.load %arg11[%c24, %c0_28] : memref<64x384xf32, #tpu.memory_space<vmem>>, vector<8x384xf32>
    %90 = arith.truncf %88 : vector<8x128xf32> to vector<8x128xbf16>
    %cst_29 = arith.constant dense<0.000000e+00> : vector<8x384xf32>
    %91 = tpu.matmul %90, %11, %cst_29 {dimension_numbers = #tpu.dot_dimension_numbers<[1], [0], [0], [1], [0, 0, 1, 1], [], []>} : vector<8x128xbf16>, vector<128x384xbf16>, vector<8x384xf32> -> vector<8x384xf32>
    %92 = vector.broadcast %12 : vector<1x384xf32> to vector<8x384xf32>
    %93 = arith.addf %91, %92 : vector<8x384xf32>
    %94 = vector.extract_strided_slice %89 {offsets = [0, 0], sizes = [8, 256], strides = [1, 1]} : vector<8x384xf32> to vector<8x256xf32>
    %95 = vector.extract_strided_slice %93 {offsets = [0, 0], sizes = [8, 256], strides = [1, 1]} : vector<8x384xf32> to vector<8x256xf32>
    %96 = arith.addf %94, %95 : vector<8x256xf32>
    %97 = arith.negf %96 : vector<8x256xf32>
    %98 = math.exp %97 : vector<8x256xf32>
    %cst_30 = arith.constant 1.000000e+00 : f32
    %99 = vector.broadcast %cst_30 : f32 to vector<8x256xf32>
    %100 = arith.addf %99, %98 : vector<8x256xf32>
    %101 = arith.divf %99, %100 : vector<8x256xf32>
    %102 = vector.extract_strided_slice %101 {offsets = [0, 0], sizes = [8, 128], strides = [1, 1]} : vector<8x256xf32> to vector<8x128xf32>
    %103 = vector.extract_strided_slice %101 {offsets = [0, 128], sizes = [8, 128], strides = [1, 1]} : vector<8x256xf32> to vector<8x128xf32>
    %104 = vector.extract_strided_slice %89 {offsets = [0, 256], sizes = [8, 128], strides = [1, 1]} : vector<8x384xf32> to vector<8x128xf32>
    %105 = vector.extract_strided_slice %93 {offsets = [0, 256], sizes = [8, 128], strides = [1, 1]} : vector<8x384xf32> to vector<8x128xf32>
    %106 = arith.mulf %102, %105 : vector<8x128xf32>
    %107 = arith.addf %104, %106 : vector<8x128xf32>
    %108 = math.tanh %107 : vector<8x128xf32>
    %cst_31 = arith.constant 1.000000e+00 : f32
    %109 = vector.broadcast %cst_31 : f32 to vector<8x128xf32>
    %110 = arith.subf %109, %103 : vector<8x128xf32>
    %111 = arith.mulf %110, %108 : vector<8x128xf32>
    %112 = arith.mulf %103, %88 : vector<8x128xf32>
    %113 = arith.addf %111, %112 : vector<8x128xf32>
    %c32 = arith.constant 32 : index
    %c0_32 = arith.constant 0 : index
    %114 = vector.load %arg11[%c32, %c0_32] : memref<64x384xf32, #tpu.memory_space<vmem>>, vector<8x384xf32>
    %115 = arith.truncf %113 : vector<8x128xf32> to vector<8x128xbf16>
    %cst_33 = arith.constant dense<0.000000e+00> : vector<8x384xf32>
    %116 = tpu.matmul %115, %11, %cst_33 {dimension_numbers = #tpu.dot_dimension_numbers<[1], [0], [0], [1], [0, 0, 1, 1], [], []>} : vector<8x128xbf16>, vector<128x384xbf16>, vector<8x384xf32> -> vector<8x384xf32>
    %117 = vector.broadcast %12 : vector<1x384xf32> to vector<8x384xf32>
    %118 = arith.addf %116, %117 : vector<8x384xf32>
    %119 = vector.extract_strided_slice %114 {offsets = [0, 0], sizes = [8, 256], strides = [1, 1]} : vector<8x384xf32> to vector<8x256xf32>
    %120 = vector.extract_strided_slice %118 {offsets = [0, 0], sizes = [8, 256], strides = [1, 1]} : vector<8x384xf32> to vector<8x256xf32>
    %121 = arith.addf %119, %120 : vector<8x256xf32>
    %122 = arith.negf %121 : vector<8x256xf32>
    %123 = math.exp %122 : vector<8x256xf32>
    %cst_34 = arith.constant 1.000000e+00 : f32
    %124 = vector.broadcast %cst_34 : f32 to vector<8x256xf32>
    %125 = arith.addf %124, %123 : vector<8x256xf32>
    %126 = arith.divf %124, %125 : vector<8x256xf32>
    %127 = vector.extract_strided_slice %126 {offsets = [0, 0], sizes = [8, 128], strides = [1, 1]} : vector<8x256xf32> to vector<8x128xf32>
    %128 = vector.extract_strided_slice %126 {offsets = [0, 128], sizes = [8, 128], strides = [1, 1]} : vector<8x256xf32> to vector<8x128xf32>
    %129 = vector.extract_strided_slice %114 {offsets = [0, 256], sizes = [8, 128], strides = [1, 1]} : vector<8x384xf32> to vector<8x128xf32>
    %130 = vector.extract_strided_slice %118 {offsets = [0, 256], sizes = [8, 128], strides = [1, 1]} : vector<8x384xf32> to vector<8x128xf32>
    %131 = arith.mulf %127, %130 : vector<8x128xf32>
    %132 = arith.addf %129, %131 : vector<8x128xf32>
    %133 = math.tanh %132 : vector<8x128xf32>
    %cst_35 = arith.constant 1.000000e+00 : f32
    %134 = vector.broadcast %cst_35 : f32 to vector<8x128xf32>
    %135 = arith.subf %134, %128 : vector<8x128xf32>
    %136 = arith.mulf %135, %133 : vector<8x128xf32>
    %137 = arith.mulf %128, %113 : vector<8x128xf32>
    %138 = arith.addf %136, %137 : vector<8x128xf32>
    %c40 = arith.constant 40 : index
    %c0_36 = arith.constant 0 : index
    %139 = vector.load %arg11[%c40, %c0_36] : memref<64x384xf32, #tpu.memory_space<vmem>>, vector<8x384xf32>
    %140 = arith.truncf %138 : vector<8x128xf32> to vector<8x128xbf16>
    %cst_37 = arith.constant dense<0.000000e+00> : vector<8x384xf32>
    %141 = tpu.matmul %140, %11, %cst_37 {dimension_numbers = #tpu.dot_dimension_numbers<[1], [0], [0], [1], [0, 0, 1, 1], [], []>} : vector<8x128xbf16>, vector<128x384xbf16>, vector<8x384xf32> -> vector<8x384xf32>
    %142 = vector.broadcast %12 : vector<1x384xf32> to vector<8x384xf32>
    %143 = arith.addf %141, %142 : vector<8x384xf32>
    %144 = vector.extract_strided_slice %139 {offsets = [0, 0], sizes = [8, 256], strides = [1, 1]} : vector<8x384xf32> to vector<8x256xf32>
    %145 = vector.extract_strided_slice %143 {offsets = [0, 0], sizes = [8, 256], strides = [1, 1]} : vector<8x384xf32> to vector<8x256xf32>
    %146 = arith.addf %144, %145 : vector<8x256xf32>
    %147 = arith.negf %146 : vector<8x256xf32>
    %148 = math.exp %147 : vector<8x256xf32>
    %cst_38 = arith.constant 1.000000e+00 : f32
    %149 = vector.broadcast %cst_38 : f32 to vector<8x256xf32>
    %150 = arith.addf %149, %148 : vector<8x256xf32>
    %151 = arith.divf %149, %150 : vector<8x256xf32>
    %152 = vector.extract_strided_slice %151 {offsets = [0, 0], sizes = [8, 128], strides = [1, 1]} : vector<8x256xf32> to vector<8x128xf32>
    %153 = vector.extract_strided_slice %151 {offsets = [0, 128], sizes = [8, 128], strides = [1, 1]} : vector<8x256xf32> to vector<8x128xf32>
    %154 = vector.extract_strided_slice %139 {offsets = [0, 256], sizes = [8, 128], strides = [1, 1]} : vector<8x384xf32> to vector<8x128xf32>
    %155 = vector.extract_strided_slice %143 {offsets = [0, 256], sizes = [8, 128], strides = [1, 1]} : vector<8x384xf32> to vector<8x128xf32>
    %156 = arith.mulf %152, %155 : vector<8x128xf32>
    %157 = arith.addf %154, %156 : vector<8x128xf32>
    %158 = math.tanh %157 : vector<8x128xf32>
    %cst_39 = arith.constant 1.000000e+00 : f32
    %159 = vector.broadcast %cst_39 : f32 to vector<8x128xf32>
    %160 = arith.subf %159, %153 : vector<8x128xf32>
    %161 = arith.mulf %160, %158 : vector<8x128xf32>
    %162 = arith.mulf %153, %138 : vector<8x128xf32>
    %163 = arith.addf %161, %162 : vector<8x128xf32>
    %c48 = arith.constant 48 : index
    %c0_40 = arith.constant 0 : index
    %164 = vector.load %arg11[%c48, %c0_40] : memref<64x384xf32, #tpu.memory_space<vmem>>, vector<8x384xf32>
    %165 = arith.truncf %163 : vector<8x128xf32> to vector<8x128xbf16>
    %cst_41 = arith.constant dense<0.000000e+00> : vector<8x384xf32>
    %166 = tpu.matmul %165, %11, %cst_41 {dimension_numbers = #tpu.dot_dimension_numbers<[1], [0], [0], [1], [0, 0, 1, 1], [], []>} : vector<8x128xbf16>, vector<128x384xbf16>, vector<8x384xf32> -> vector<8x384xf32>
    %167 = vector.broadcast %12 : vector<1x384xf32> to vector<8x384xf32>
    %168 = arith.addf %166, %167 : vector<8x384xf32>
    %169 = vector.extract_strided_slice %164 {offsets = [0, 0], sizes = [8, 256], strides = [1, 1]} : vector<8x384xf32> to vector<8x256xf32>
    %170 = vector.extract_strided_slice %168 {offsets = [0, 0], sizes = [8, 256], strides = [1, 1]} : vector<8x384xf32> to vector<8x256xf32>
    %171 = arith.addf %169, %170 : vector<8x256xf32>
    %172 = arith.negf %171 : vector<8x256xf32>
    %173 = math.exp %172 : vector<8x256xf32>
    %cst_42 = arith.constant 1.000000e+00 : f32
    %174 = vector.broadcast %cst_42 : f32 to vector<8x256xf32>
    %175 = arith.addf %174, %173 : vector<8x256xf32>
    %176 = arith.divf %174, %175 : vector<8x256xf32>
    %177 = vector.extract_strided_slice %176 {offsets = [0, 0], sizes = [8, 128], strides = [1, 1]} : vector<8x256xf32> to vector<8x128xf32>
    %178 = vector.extract_strided_slice %176 {offsets = [0, 128], sizes = [8, 128], strides = [1, 1]} : vector<8x256xf32> to vector<8x128xf32>
    %179 = vector.extract_strided_slice %164 {offsets = [0, 256], sizes = [8, 128], strides = [1, 1]} : vector<8x384xf32> to vector<8x128xf32>
    %180 = vector.extract_strided_slice %168 {offsets = [0, 256], sizes = [8, 128], strides = [1, 1]} : vector<8x384xf32> to vector<8x128xf32>
    %181 = arith.mulf %177, %180 : vector<8x128xf32>
    %182 = arith.addf %179, %181 : vector<8x128xf32>
    %183 = math.tanh %182 : vector<8x128xf32>
    %cst_43 = arith.constant 1.000000e+00 : f32
    %184 = vector.broadcast %cst_43 : f32 to vector<8x128xf32>
    %185 = arith.subf %184, %178 : vector<8x128xf32>
    %186 = arith.mulf %185, %183 : vector<8x128xf32>
    %187 = arith.mulf %178, %163 : vector<8x128xf32>
    %188 = arith.addf %186, %187 : vector<8x128xf32>
    %c56 = arith.constant 56 : index
    %c0_44 = arith.constant 0 : index
    %189 = vector.load %arg11[%c56, %c0_44] : memref<64x384xf32, #tpu.memory_space<vmem>>, vector<8x384xf32>
    %190 = arith.truncf %188 : vector<8x128xf32> to vector<8x128xbf16>
    %cst_45 = arith.constant dense<0.000000e+00> : vector<8x384xf32>
    %191 = tpu.matmul %190, %11, %cst_45 {dimension_numbers = #tpu.dot_dimension_numbers<[1], [0], [0], [1], [0, 0, 1, 1], [], []>} : vector<8x128xbf16>, vector<128x384xbf16>, vector<8x384xf32> -> vector<8x384xf32>
    %192 = vector.broadcast %12 : vector<1x384xf32> to vector<8x384xf32>
    %193 = arith.addf %191, %192 : vector<8x384xf32>
    %194 = vector.extract_strided_slice %189 {offsets = [0, 0], sizes = [8, 256], strides = [1, 1]} : vector<8x384xf32> to vector<8x256xf32>
    %195 = vector.extract_strided_slice %193 {offsets = [0, 0], sizes = [8, 256], strides = [1, 1]} : vector<8x384xf32> to vector<8x256xf32>
    %196 = arith.addf %194, %195 : vector<8x256xf32>
    %197 = arith.negf %196 : vector<8x256xf32>
    %198 = math.exp %197 : vector<8x256xf32>
    %cst_46 = arith.constant 1.000000e+00 : f32
    %199 = vector.broadcast %cst_46 : f32 to vector<8x256xf32>
    %200 = arith.addf %199, %198 : vector<8x256xf32>
    %201 = arith.divf %199, %200 : vector<8x256xf32>
    %202 = vector.extract_strided_slice %201 {offsets = [0, 0], sizes = [8, 128], strides = [1, 1]} : vector<8x256xf32> to vector<8x128xf32>
    %203 = vector.extract_strided_slice %201 {offsets = [0, 128], sizes = [8, 128], strides = [1, 1]} : vector<8x256xf32> to vector<8x128xf32>
    %204 = vector.extract_strided_slice %189 {offsets = [0, 256], sizes = [8, 128], strides = [1, 1]} : vector<8x384xf32> to vector<8x128xf32>
    %205 = vector.extract_strided_slice %193 {offsets = [0, 256], sizes = [8, 128], strides = [1, 1]} : vector<8x384xf32> to vector<8x128xf32>
    %206 = arith.mulf %202, %205 : vector<8x128xf32>
    %207 = arith.addf %204, %206 : vector<8x128xf32>
    %208 = math.tanh %207 : vector<8x128xf32>
    %cst_47 = arith.constant 1.000000e+00 : f32
    %209 = vector.broadcast %cst_47 : f32 to vector<8x128xf32>
    %210 = arith.subf %209, %203 : vector<8x128xf32>
    %211 = arith.mulf %210, %208 : vector<8x128xf32>
    %212 = arith.mulf %203, %188 : vector<8x128xf32>
    %213 = arith.addf %211, %212 : vector<8x128xf32>
    %c0_48 = arith.constant 0 : index
    %c0_49 = arith.constant 0 : index
    %214 = vector.load %arg10[%c0_48, %c0_49] : memref<8x128xf32, #tpu.memory_space<vmem>>, vector<8x128xf32>
    tpu.vector_store %arg10[%c0_48, %c0_49], %213 {strides = array<i32>} : memref<8x128xf32, #tpu.memory_space<vmem>>, vector<8x128xf32>,
    %c0_i32_50 = arith.constant 0 : i32
    %215 = arith.cmpi eq, %arg1, %c0_i32_50 : i32
    %216 = arith.extui %215 : i1 to i32
    %c0_i32_51 = arith.constant 0 : i32
    %217 = arith.cmpi ne, %216, %c0_i32_51 : i32
    scf.if %217 {
      %218 = arith.truncf %213 : vector<8x128xf32> to vector<8x128xbf16>
      %c0_52 = arith.constant 0 : index
      %c0_53 = arith.constant 0 : index
      %219 = vector.load %arg7[%c0_52, %c0_53] : memref<128x128xbf16, #tpu.memory_space<vmem>>, vector<128x128xbf16>
      %cst_54 = arith.constant dense<0.000000e+00> : vector<8x128xf32>
      %220 = tpu.matmul %218, %219, %cst_54 {dimension_numbers = #tpu.dot_dimension_numbers<[1], [0], [0], [1], [0, 0, 1, 1], [], []>} : vector<8x128xbf16>, vector<128x128xbf16>, vector<8x128xf32> -> vector<8x128xf32>
      %c0_55 = arith.constant 0 : index
      %c0_56 = arith.constant 0 : index
      %221 = vector.load %arg8[%c0_55, %c0_56] : memref<1x128xf32, #tpu.memory_space<vmem>>, vector<1x128xf32>
      %222 = vector.broadcast %221 : vector<1x128xf32> to vector<8x128xf32>
      %223 = arith.addf %220, %222 : vector<8x128xf32>
      %c0_57 = arith.constant 0 : index
      %c0_58 = arith.constant 0 : index
      %224 = vector.load %arg9[%c0_57, %c0_58] : memref<8x128xf32, #tpu.memory_space<vmem>>, vector<8x128xf32>
      tpu.vector_store %arg9[%c0_57, %c0_58], %223 {strides = array<i32>} : memref<8x128xf32, #tpu.memory_space<vmem>>, vector<8x128xf32>,
    } else {
    }
    return
  }
  func.func @transform_0(%arg0: i32, %arg1: i32) -> (i32, i32, i32) {
    %c0_i32 = arith.constant 0 : i32
    %c0_i32_0 = arith.constant 0 : i32
    return %arg0, %arg1, %c0_i32 : i32, i32, i32
  }
  func.func @transform_1(%arg0: i32, %arg1: i32) -> (i32, i32) {
    %c0_i32 = arith.constant 0 : i32
    %c0_i32_0 = arith.constant 0 : i32
    %c0_i32_1 = arith.constant 0 : i32
    return %c0_i32, %c0_i32_0 : i32, i32
  }
  func.func @transform_2(%arg0: i32, %arg1: i32) -> (i32, i32) {
    %c0_i32 = arith.constant 0 : i32
    %c0_i32_0 = arith.constant 0 : i32
    %c0_i32_1 = arith.constant 0 : i32
    return %c0_i32, %c0_i32_0 : i32, i32
  }
  func.func @transform_3(%arg0: i32, %arg1: i32) -> (i32, i32) {
    %c0_i32 = arith.constant 0 : i32
    %c0_i32_0 = arith.constant 0 : i32
    %c0_i32_1 = arith.constant 0 : i32
    return %c0_i32, %c0_i32_0 : i32, i32
  }
  func.func @transform_4(%arg0: i32, %arg1: i32) -> (i32, i32) {
    %c0_i32 = arith.constant 0 : i32
    %c0_i32_0 = arith.constant 0 : i32
    %c0_i32_1 = arith.constant 0 : i32
    return %c0_i32, %c0_i32_0 : i32, i32
  }
  func.func @transform_5(%arg0: i32, %arg1: i32) -> (i32, i32) {
    %c0_i32 = arith.constant 0 : i32
    %c0_i32_0 = arith.constant 0 : i32
    %c0_i32_1 = arith.constant 0 : i32
    return %c0_i32, %c0_i32_0 : i32, i32
  }
  func.func @transform_6(%arg0: i32, %arg1: i32) -> (i32, i32) {
    %c0_i32 = arith.constant 0 : i32
    %c0_i32_0 = arith.constant 0 : i32
    %c0_i32_1 = arith.constant 0 : i32
    return %c0_i32, %c0_i32_0 : i32, i32
  }
  func.func @transform_7(%arg0: i32, %arg1: i32) -> (i32, i32) {
    %c0_i32 = arith.constant 0 : i32
    %c0_i32_0 = arith.constant 0 : i32
    return %arg0, %c0_i32 : i32, i32
  }
}

</mosaic_0001>

<bundles_post_ra>
// kernel: tpu_custom_call.1
= control target key start
LH: loop header
LB: loop body
LE: loop exit
PB: predicated region body
PF: predicated region fallthrough
CT: control target
= control target key end

     0   :  { %12 = vsyncpa [#allocation5], 0  ;;  %s2917_s0 = inlined_call_operand.hbm [shape: bf16[1,64,128], index: 0, kind: input, shape index: {}]   ;;  %s2918_s1 = inlined_call_operand.hbm [shape: bf16[128,384], index: 1, kind: input, shape index: {}]   ;;  %s2919_s2 = inlined_call_operand.hbm [shape: bf16[128,384], index: 2, kind: input, shape index: {}]   ;;  %s2920_s3 = inlined_call_operand.vmem [shape: f32[1,384], index: 3, kind: input, shape index: {}]   ;;  %s2921_s4 = inlined_call_operand.vmem [shape: f32[1,384], index: 4, kind: input, shape index: {}]   ;;  %s2922_s5 = inlined_call_operand.hbm [shape: bf16[128,128], index: 5, kind: input, shape index: {}]   ;;  %s2923_s6 = inlined_call_operand.vmem [shape: f32[1,128], index: 6, kind: input, shape index: {}]   ;;  %s2924_s7 = inlined_call_operand.hbm [shape: f32[8,128], index: 7, kind: output, shape index: {}]  }
   0x1   :  { %13 = vsyncpa [#allocation8], 0 }
   0x2   :  { %14 = vsyncpa [#allocation11], 0 }
   0x3   :  { %15 = vsyncpa [#allocation6], 0  ;;  %s2304_s24 = smov [#allocation7]   ;;  %s2186_s28 = scalar_lea.hbm %s2918_s1, 3072 }
   0x4   :  { %s33_s25 = sshll.u32 %s2304_s24, 4  ;;  %p2187_p0 = scmp.ne.s32.totalorder %s2918_s1, %s2186_s28  ;;  %s34_s25 = int_to_ptr.vmem [resolvable:$true] %s33_s25 }
   0x5   :  { %p2190_p1 = scmp.lt.u32.totalorder %s2186_s28, %s2918_s1 }
   0x7   :  { %p2192_p2 = pnand %p2190_p1, %p2187_p0 }
   0x9   :  { %2195 = shalt.err (!%p2192_p2)
}
   0xa   :  { %s2196_s10 = scalar_lea.vmem %s34_s25, 3072  ;;  %p2201_p4 = scmp.lt.s32.totalorder %s34_s25, %s34_s25 }
   0xb   :  { %p2197_p3 = scmp.ne.s32.totalorder %s34_s25, %s2196_s10  ;;  %p2202_p5 = scmp.lt.s32.totalorder %s2196_s10, %s2196_s10 }
   0xd   :  { %p2203_p6 = por %p2202_p5, %p2201_p4 }
   0xf   :  { %p2204_p7 = pnand %p2203_p6, %p2197_p3 }
  0x11   :  { %2207 = shalt.err (!%p2204_p7)
}
  0x12   :  { %s2305_s11 = smov 192   ;;  %s2306_s12 = smov 12  }
  0x13   :  { %39 = dma.hbm_to_vmem [thread:$0]  %s2918_s1, 3072, %s34_s25, [#allocation8], %s2305_s11, %s2305_s11, %s2306_s12  }
  0x14   :  { %s2307_s15 = smov [#allocation4]   ;;  %s2208_s19 = scalar_lea.hbm %s2917_s0, 512 }
  0x15   :  { %s21_s16 = sshll.u32 %s2307_s15, 4  ;;  %p2209_p8 = scmp.ne.s32.totalorder %s2917_s0, %s2208_s19  ;;  %s22_s16 = int_to_ptr.vmem [resolvable:$true] %s21_s16 }
  0x16   :  { %p2212_p9 = scmp.lt.u32.totalorder %s2208_s19, %s2917_s0 }
  0x18   :  { %p2214_p10 = pnand %p2212_p9, %p2209_p8 }
  0x1a   :  { %2217 = shalt.err (!%p2214_p10)
}
  0x1b   :  { %s2218_s24 = scalar_lea.vmem %s22_s16, 512  ;;  %p2223_p12 = scmp.lt.s32.totalorder %s22_s16, %s22_s16 }
  0x1c   :  { %p2219_p11 = scmp.ne.s32.totalorder %s22_s16, %s2218_s24  ;;  %p2224_p13 = scmp.lt.s32.totalorder %s2218_s24, %s2218_s24 }
  0x1e   :  { %p2225_p0 = por %p2224_p13, %p2223_p12 }
  0x20   :  { %p2226_p1 = pnand %p2225_p0, %p2219_p11 }
  0x22   :  { %2229 = shalt.err (!%p2226_p1)
}
  0x23   :  { %s2308_s1 = smov 64   ;;  %s2309_s25 = smov 4  }
  0x24   :  { %27 = dma.hbm_to_vmem [thread:$0]  %s2917_s0, 512, %s22_s16, [#allocation5], %s2308_s1, %s2308_s1, %s2309_s25  }
  0x25   :  { %s2310_s28 = smov [#allocation9]   ;;  %s2311_s30 = smov [#allocation10]  }
  0x26   :  { %s45_s29 = sshll.u32 %s2310_s28, 4  ;;  %s61_s8 = sshll.u32 %s2311_s30, 4  ;;  %s46_s29 = int_to_ptr.vmem [resolvable:$true] %s45_s29  ;;  %s2387_s8 = int_to_ptr.vmem [resolvable:$true] %s61_s8 }
  0x27   :  { %s2230_s13 = scalar_lea.hbm %s2919_s2, 3072 }
  0x28   :  { %p2231_p2 = scmp.ne.s32.totalorder %s2919_s2, %s2230_s13  ;;  %p2234_p3 = scmp.lt.u32.totalorder %s2230_s13, %s2919_s2 }
  0x2a   :  { %p2236_p4 = pnand %p2234_p3, %p2231_p2 }
  0x2c   :  { %2239 = shalt.err (!%p2236_p4)
}
  0x2d   :  { %s2240_s0 = scalar_lea.vmem %s46_s29, 3072  ;;  %p2245_p6 = scmp.lt.s32.totalorder %s46_s29, %s46_s29 }
  0x2e   :  { %p2241_p5 = scmp.ne.s32.totalorder %s46_s29, %s2240_s0  ;;  %p2246_p7 = scmp.lt.s32.totalorder %s2240_s0, %s2240_s0 }
  0x30   :  { %p2247_p8 = por %p2246_p7, %p2245_p6 }
  0x32   :  { %p2248_p9 = pnand %p2247_p8, %p2241_p5 }
  0x34   :  { %2251 = shalt.err (!%p2248_p9)
}
  0x35   :  { %51 = dma.hbm_to_vmem [thread:$0]  %s2919_s2, 3072, %s46_s29, [#allocation8], %s2305_s11, %s2305_s11, %s2306_s12  }
  0x36   :  { %s2252_s22 = scalar_lea.hbm %s2922_s5, 1024 }
  0x37   :  { %p2253_p10 = scmp.ne.s32.totalorder %s2922_s5, %s2252_s22  ;;  %p2256_p11 = scmp.lt.u32.totalorder %s2252_s22, %s2922_s5 }
  0x39   :  { %p2258_p12 = pnand %p2256_p11, %p2253_p10 }
  0x3b   :  { %2261 = shalt.err (!%p2258_p12)
}
  0x3c   :  { %s2262_s28 = scalar_lea.vmem %s2387_s8, 1024  ;;  %p2267_p0 = scmp.lt.s32.totalorder %s2387_s8, %s2387_s8 }
  0x3d   :  { %p2263_p13 = scmp.ne.s32.totalorder %s2387_s8, %s2262_s28  ;;  %p2268_p1 = scmp.lt.s32.totalorder %s2262_s28, %s2262_s28 }
  0x3f   :  { %p2269_p2 = por %p2268_p1, %p2267_p0 }
  0x41   :  { %p2270_p3 = pnand %p2269_p2, %p2263_p13 }
  0x43   :  { %2273 = shalt.err (!%p2270_p3)
}
  0x44   :  { %67 = dma.hbm_to_vmem [thread:$0]  %s2922_s5, 1024, %s2387_s8, [#allocation11], %s2308_s1, %s2308_s1, %s2309_s25  }
  0x45   :  { %2296 = dma.done.wait [#allocation5], 512  }
  0x46   :  { %2297 = vsyncadd [#allocation5], 4294966784 }
  0x47   :  { %2298 = dma.done.wait [#allocation8], 6144  }
  0x48   :  { %2299 = vsyncadd [#allocation8], 4294961152 }
  0x49   :  { %2300 = dma.done.wait [#allocation11], 1024  }
  0x4a   :  { %2301 = vsyncadd [#allocation11], 4294966272  ;;  %v2925_v0 = vmov 0   ;;  %v2006_v1 = vld [vmem:[#allocation7 + $0x4] ss:$12 sps:$4 sm:$0xff]   ;;  %v2041_v31 = vld [vmem:[#allocation4 + $0x8] sm:$0xff]   ;;  %v130_v55 = vlaneseq }
  0x4b   :  { %329 = vmatprep.mubr.bf16.mxu0 %v2925_v0  ;;  %v2008_v2 = vld [vmem:[#allocation7] ss:$12 sps:$4 sm:$0xff]   ;;  %297 = vmatprep.subr.bf16.mxu0 %v2006_v1  ;;  %v2009_v3 = vld [vmem:[#allocation7 + $0x1c] ss:$12 sps:$4 sm:$0xff]   ;;  %v2011_v4 = vld [vmem:[#allocation7 + $0x18] ss:$12 sps:$4 sm:$0xff]  }
  0x4c   :  { %298 = vmatpush1.bf16.msra.mxu0 %v2008_v2  ;;  %v2012_v5 = vld [vmem:[#allocation7 + $0x34] ss:$12 sps:$4 sm:$0xff]   ;;  %v2014_v6 = vld [vmem:[#allocation7 + $0x30] ss:$12 sps:$4 sm:$0xff]   ;;  %v2015_v7 = vld [vmem:[#allocation7 + $0x4c] ss:$12 sps:$4 sm:$0xff]  }
  0x4d   :  { %299 = vmatprep.subr.bf16.mxu0 %v2009_v3  ;;  %v2027_v8 = vld [vmem:[#allocation7 + $0x8] ss:$12 sps:$4 sm:$0xff]   ;;  %v2018_v10 = vld [vmem:[#allocation7 + $0x64] ss:$12 sps:$4 sm:$0xff]   ;;  %v2031_v11 = vld [vmem:[#allocation7 + $0x20] ss:$12 sps:$4 sm:$0xff]  }
  0x4e   :  { %v2017_v9 = vld [vmem:[#allocation7 + $0x48] ss:$12 sps:$4 sm:$0xff]   ;;  %1789 = vmatprep.subr.bf16.mxu1 %v2027_v8  ;;  %v2032_v12 = vld [vmem:[#allocation4] sm:$0xff]   ;;  %v2040_v16 = vld [vmem:[#allocation7 + $0x50] ss:$12 sps:$4 sm:$0xff]   ;;  %v2927_v38 = vmov 0.0  }
  0x4f   :  { %1790 = vmatpush3.bf16.msra.mxu1 %v2027_v8  ;;  %v2020_v13 = vld [vmem:[#allocation7 + $0x60] ss:$12 sps:$4 sm:$0xff]   ;;  %v2036_v14 = vld [vmem:[#allocation7 + $0x38] ss:$12 sps:$4 sm:$0xff]   ;;  %1805 = vmatprep.mubr.bf16.mxu1 %v2032_v12  ;;  %v2021_v15 = vld [vmem:[#allocation7 + $0x7c] ss:$12 sps:$4 sm:$0xff]  }
  0x50   :  { %300 = vmatpush1.bf16.msra.mxu0 %v2011_v4  ;;  %1791 = vmatprep.subr.bf16.mxu1 %v2031_v11  ;;  %v2023_v17 = vld [vmem:[#allocation7 + $0x78] ss:$12 sps:$4 sm:$0xff]   ;;  %v2024_v18 = vld [vmem:[#allocation7 + $0x94] ss:$12 sps:$4 sm:$0xff]   ;;  %v2026_v20 = vld [vmem:[#allocation7 + $0x90] ss:$12 sps:$4 sm:$0xff]  }
  0x51   :  { %301 = vmatprep.subr.bf16.mxu0 %v2012_v5  ;;  %v2045_v19 = vld [vmem:[#allocation7 + $0x68] ss:$12 sps:$4 sm:$0xff]   ;;  %v2028_v21 = vld [vmem:[#allocation7 + $0xac] ss:$12 sps:$4 sm:$0xff]   ;;  %v2425_v24 = vld [vmem:[#allocation9 + $0x4] ss:$12 sps:$4 sm:$0xff]  }
  0x52   :  { %v2049_v22 = vld [vmem:[#allocation7 + $0x80] ss:$12 sps:$4 sm:$0xff]   ;;  %v2030_v23 = vld [vmem:[#allocation7 + $0xa8] ss:$12 sps:$4 sm:$0xff]   ;;  %v2054_v25 = vld [vmem:[#allocation7 + $0x98] ss:$12 sps:$4 sm:$0xff]  }
  0x53   :  { %1792 = vmatpush3.bf16.msra.mxu1 %v2031_v11  ;;  %v2427_v26 = vld [vmem:[#allocation9] ss:$12 sps:$4 sm:$0xff]   ;;  %v2430_v27 = vld [vmem:[#allocation9 + $0x1c] ss:$12 sps:$4 sm:$0xff]   ;;  %v2433_v29 = vld [vmem:[#allocation9 + $0x18] ss:$12 sps:$4 sm:$0xff]  }
  0x54   :  { %302 = vmatpush1.bf16.msra.mxu0 %v2014_v6  ;;  %1793 = vmatprep.subr.bf16.mxu1 %v2036_v14  ;;  %v2058_v28 = vld [vmem:[#allocation7 + $0xb0] ss:$12 sps:$4 sm:$0xff]   ;;  %v2437_v30 = vld [vmem:[#allocation9 + $0x34] ss:$12 sps:$4 sm:$0xff]   ;;  %v2443_v33 = vld [vmem:[#allocation9 + $0x4c] ss:$12 sps:$4 sm:$0xff]  }
  0x55   :  { %303 = vmatprep.subr.bf16.mxu0 %v2015_v7  ;;  %v2440_v32 = vld [vmem:[#allocation9 + $0x30] ss:$12 sps:$4 sm:$0xff]   ;;  %v2445_v34 = vld [vmem:[#allocation9 + $0x48] ss:$12 sps:$4 sm:$0xff]   ;;  %v2454_v39 = vld [vmem:[#allocation9 + $0x20] ss:$12 sps:$4 sm:$0xff]  }
  0x56   :  { %v2050_v35 = vld [vmem:[#allocation4 + $0x10] sm:$0xff]   ;;  %v2460_v40 = vld [vmem:[#allocation9 + $0x60] ss:$12 sps:$4 sm:$0xff]   ;;  %v2463_v41 = vld [vmem:[#allocation9 + $0x7c] ss:$12 sps:$4 sm:$0xff]   ;;  %vm2314_vm0 = vmmov 0  }
  0x57   :  { %1794 = vmatpush3.bf16.msra.mxu1 %v2036_v14  ;;  %v2447_v36 = vld [vmem:[#allocation9 + $0x8] ss:$12 sps:$4 sm:$0xff]   ;;  %v2449_v37 = vld [vmem:[#allocation9 + $0x64] ss:$12 sps:$4 sm:$0xff]   ;;  %v2059_v43 = vld [vmem:[#allocation4 + $0x18] sm:$0xff]   ;;  %v2315_v53 = vmov 0.0|0.0  }
  0x58   :  { %304 = vmatpush1.bf16.msra.mxu0 %v2017_v9  ;;  %1795 = vmatprep.subr.bf16.mxu1 %v2040_v16  ;;  %v2466_v42 = vld [vmem:[#allocation9 + $0x38] ss:$12 sps:$4 sm:$0xff]   ;;  %v2474_v45 = vld [vmem:[#allocation9 + $0x94] ss:$12 sps:$4 sm:$0xff]   ;;  %v2477_v46 = vld [vmem:[#allocation9 + $0x50] ss:$12 sps:$4 sm:$0xff]  }
  0x59   :  { %305 = vmatprep.subr.bf16.mxu0 %v2018_v10  ;;  %v2470_v44 = vld [vmem:[#allocation9 + $0x78] ss:$12 sps:$4 sm:$0xff]   ;;  %v2483_v47 = vld [vmem:[#allocation9 + $0x90] ss:$12 sps:$4 sm:$0xff]   ;;  %v2489_v49 = vld [vmem:[#allocation9 + $0x68] ss:$12 sps:$4 sm:$0xff]  }
  0x5a   :  { %v2486_v48 = vld [vmem:[#allocation9 + $0xac] ss:$12 sps:$4 sm:$0xff]   ;;  %v2493_v50 = vld [vmem:[#allocation9 + $0xa8] ss:$12 sps:$4 sm:$0xff]   ;;  %v2511_v54 = vld [vmem:[#allocation9 + $0xb0] ss:$12 sps:$4 sm:$0xff]  }
  0x5b   :  { %1796 = vmatpush3.bf16.msra.mxu1 %v2040_v16  ;;  %v2498_v51 = vld [vmem:[#allocation9 + $0x80] ss:$12 sps:$4 sm:$0xff]   ;;  %v2504_v52 = vld [vmem:[#allocation9 + $0x98] ss:$12 sps:$4 sm:$0xff]   ;;  %v2548_v56 = vshrl.u32 %v130_v55, 7  ;;  %s2316_s29 = smov [#allocation12]  }
  0x5c   :  { %306 = vmatpush1.bf16.msra.mxu0 %v2020_v13  ;;  %1797 = vmatprep.subr.bf16.mxu1 %v2045_v19  ;;  %v128_v58 = vld [vmem:[%s2920_s3] sm:$0x7]  ;;  %s1608_s30 = sshll.u32 %s2316_s29, 4  ;;  %s1609_s30 = int_to_ptr.vmem [resolvable:$true] %s1608_s30 }
  0x5d   :  { %307 = vmatprep.subr.bf16.mxu0 %v2021_v15  ;;  %v132_v57 = vsub.s32 0, %v2548_v56  ;;  %v136_v59 = vsub.s32 1, %v2548_v56  ;;  %v2929_v4 = vsub.s32 2, %v2548_v56  ;;  %s2274_s8 = scalar_lea.vmem %s1609_s30, 128  ;;  %p2279_p5 = scmp.lt.s32.totalorder %s1609_s30, %s1609_s30 }
  0x5e   :  { %p2275_p4 = scmp.ne.s32.totalorder %s1609_s30, %s2274_s8  ;;  %p2280_p6 = scmp.lt.s32.totalorder %s2274_s8, %s2274_s8 }
  0x5f   :  { %1798 = vmatpush3.bf16.msra.mxu1 %v2045_v19  ;;  %v133_v61 = vrot.slane %v128_v58, %v132_v57  ;;  %v137_v63 = vrot.slane %v128_v58, %v136_v59  ;;  %v2562_v6 = vrot.slane %v128_v58, %v2929_v4 }
  0x60   :  { %308 = vmatpush1.bf16.msra.mxu0 %v2023_v17  ;;  %1799 = vmatprep.subr.bf16.mxu1 %v2049_v22  ;;  %p2281_p7 = por %p2280_p6, %p2279_p5 }
  0x61   :  { %309 = vmatprep.subr.bf16.mxu0 %v2024_v18 }
  0x62   :  { %p2282_p8 = pnand %p2281_p7, %p2275_p4 }
  0x63   :  { %1800 = vmatpush3.bf16.msra.mxu1 %v2049_v22 }
  0x64   :  { %310 = vmatpush1.bf16.msra.mxu0 %v2026_v20  ;;  %1801 = vmatprep.subr.bf16.mxu1 %v2054_v25 }
  0x65   :  { %311 = vmatprep.subr.bf16.mxu0 %v2028_v21 }
  0x67   :  { %1802 = vmatpush3.bf16.msra.mxu1 %v2054_v25 }
  0x68   :  { %312 = vmatpush1.bf16.msra.mxu0 %v2030_v23  ;;  %1803 = vmatprep.subr.bf16.mxu1 %v2058_v28 }
  0x69   :  { %641 = vmatprep.subr.bf16.mxu0 %v2425_v24 }
  0x6b   :  { %330 = vmatmul.mubr.bf16.vlgmr.msra.gmra.mrb[0].mxu0 %v2032_v12  ;;  %1804 = vmatpush3.bf16.msra.mxu1 %v2058_v28 }
  0x6c   :  { %642 = vmatpush1.bf16.msra.mxu0 %v2427_v26  ;;  %339 = vmatprep.mubr.bf16.mxu0 %v2925_v0 }
  0x6d   :  { %643 = vmatprep.subr.bf16.mxu0 %v2430_v27  ;;  %1813 = vmatprep.subr.bf16.mxu1 %v2927_v38 }
  0x6e   :  { %1806 = vmatmul.mubr.bf16.vlgmr.msra.gmra.mrb[0].mxu1 %v2041_v31 }
  0x6f   :  { %1814 = vmatpush3.bf16.msra.mxu1 %v2447_v36  ;;  %1809 = vmatprep.mubr.bf16.mxu1 %v2050_v35 }
  0x70   :  { %644 = vmatpush1.bf16.msra.mxu0 %v2433_v29  ;;  %1815 = vmatprep.subr.bf16.mxu1 %v2927_v38 }
  0x71   :  { %645 = vmatprep.subr.bf16.mxu0 %v2437_v30 }
  0x73   :  { %340 = vmatmul.mubr.bf16.gmra.mrb[4].mxu0 %v2041_v31  ;;  %1816 = vmatpush3.bf16.msra.mxu1 %v2454_v39 }
  0x74   :  { %646 = vmatpush1.bf16.msra.mxu0 %v2440_v32  ;;  %349 = vmatprep.mubr.bf16.mxu0 %v2925_v0 }
  0x75   :  { %647 = vmatprep.subr.bf16.mxu0 %v2443_v33  ;;  %1817 = vmatprep.subr.bf16.mxu1 %v2927_v38 }
  0x76   :  { %1810 = vmatmul.mubr.bf16.gmra.mrb[4].mxu1 %v2059_v43 }
  0x77   :  { %1818 = vmatpush3.bf16.msra.mxu1 %v2466_v42  ;;  %1829 = vmatprep.mubr.msk.bf16.mxu1 %vm2314_vm0, %v2927_v38 }
  0x78   :  { %648 = vmatpush1.bf16.msra.mxu0 %v2445_v34  ;;  %1819 = vmatprep.subr.bf16.mxu1 %v2927_v38 }
  0x79   :  { %649 = vmatprep.subr.bf16.mxu0 %v2449_v37 }
  0x7b   :  { %350 = vmatmul.mubr.bf16.gmra.mrb[8].mxu0 %v2050_v35  ;;  %1820 = vmatpush3.bf16.msra.mxu1 %v2477_v46 }
  0x7c   :  { %650 = vmatpush1.bf16.msra.mxu0 %v2460_v40  ;;  %359 = vmatprep.mubr.bf16.mxu0 %v2925_v0 }
  0x7d   :  { %651 = vmatprep.subr.bf16.mxu0 %v2463_v41  ;;  %1821 = vmatprep.subr.bf16.mxu1 %v2927_v38 }
  0x7f   :  { %1822 = vmatpush3.bf16.msra.mxu1 %v2489_v49 }
  0x80   :  { %652 = vmatpush1.bf16.msra.mxu0 %v2470_v44  ;;  %1823 = vmatprep.subr.bf16.mxu1 %v2927_v38 }
  0x81   :  { %653 = vmatprep.subr.bf16.mxu0 %v2474_v45 }
  0x83   :  { %360 = vmatmul.mubr.bf16.gmra.mrb[12].mxu0 %v2059_v43  ;;  %1824 = vmatpush3.bf16.msra.mxu1 %v2498_v51 }
  0x84   :  { %654 = vmatpush1.bf16.msra.mxu0 %v2483_v47  ;;  %673 = vmatprep.mubr.bf16.mxu0 %v2925_v0 }
  0x85   :  { %655 = vmatprep.subr.bf16.mxu0 %v2486_v48  ;;  %1825 = vmatprep.subr.bf16.mxu1 %v2927_v38 }
  0x87   :  { %1826 = vmatpush3.bf16.msra.mxu1 %v2504_v52 }
  0x88   :  { %656 = vmatpush1.bf16.msra.mxu0 %v2493_v50  ;;  %1827 = vmatprep.subr.bf16.mxu1 %v2927_v38 }
  0x89   :  { %747 = vmatprep.subr.bf16.mxu0 %v2425_v24 }
  0x8b   :  { %674 = vmatmul.mubr.bf16.vlgmr.msra.gmra.mrb[16].mxu0 %v2315_v53  ;;  %1828 = vmatpush3.bf16.msra.mxu1 %v2511_v54 }
  0x8c   :  { %748 = vmatpush1.bf16.msra.mxu0 %v2427_v26  ;;  %779 = vmatprep.mubr.bf16.mxu0 %v2925_v0 }
  0x8d   :  { %749 = vmatprep.subr.bf16.mxu0 %v2430_v27  ;;  %1833 = vmatprep.subr.bf16.mxu1 %v2927_v38 }
  0x8e   :  { %1830 = vmatmul.mubr.bf16.vlgmr.msra.gmra.mrb[8].mxu1 %v2315_v53 }
  0x8f   :  { %1834 = vmatpush3.bf16.msra.mxu1 %v2447_v36  ;;  %1849 = vmatprep.mubr.msk.bf16.mxu1 %vm2314_vm0, %v2927_v38 }
  0x90   :  { %750 = vmatpush1.bf16.msra.mxu0 %v2433_v29  ;;  %1835 = vmatprep.subr.bf16.mxu1 %v2927_v38 }
  0x91   :  { %751 = vmatprep.subr.bf16.mxu0 %v2437_v30 }
  0x93   :  { %1836 = vmatpush3.bf16.msra.mxu1 %v2454_v39 }
  0x94   :  { %752 = vmatpush1.bf16.msra.mxu0 %v2440_v32  ;;  %1837 = vmatprep.subr.bf16.mxu1 %v2927_v38 }
  0x95   :  { %753 = vmatprep.subr.bf16.mxu0 %v2443_v33 }
  0x97   :  { %1838 = vmatpush3.bf16.msra.mxu1 %v2466_v42 }
  0x98   :  { %754 = vmatpush1.bf16.msra.mxu0 %v2445_v34  ;;  %1839 = vmatprep.subr.bf16.mxu1 %v2927_v38 }
  0x99   :  { %755 = vmatprep.subr.bf16.mxu0 %v2449_v37 }
  0x9b   :  { %1840 = vmatpush3.bf16.msra.mxu1 %v2477_v46 }
  0x9c   :  { %756 = vmatpush1.bf16.msra.mxu0 %v2460_v40  ;;  %1841 = vmatprep.subr.bf16.mxu1 %v2927_v38 }
  0x9d   :  { %757 = vmatprep.subr.bf16.mxu0 %v2463_v41 }
  0x9f   :  { %1842 = vmatpush3.bf16.msra.mxu1 %v2489_v49 }
  0xa0   :  { %758 = vmatpush1.bf16.msra.mxu0 %v2470_v44  ;;  %1843 = vmatprep.subr.bf16.mxu1 %v2927_v38 }
  0xa1   :  { %759 = vmatprep.subr.bf16.mxu0 %v2474_v45 }
  0xa3   :  { %1844 = vmatpush3.bf16.msra.mxu1 %v2498_v51 }
  0xa4   :  { %760 = vmatpush1.bf16.msra.mxu0 %v2483_v47  ;;  %1845 = vmatprep.subr.bf16.mxu1 %v2927_v38 }
  0xa5   :  { %761 = vmatprep.subr.bf16.mxu0 %v2486_v48 }
  0xa7   :  { %1846 = vmatpush3.bf16.msra.mxu1 %v2504_v52 }
  0xa8   :  { %762 = vmatpush1.bf16.msra.mxu0 %v2493_v50  ;;  %1847 = vmatprep.subr.bf16.mxu1 %v2927_v38 }
  0xa9   :  { %853 = vmatprep.subr.bf16.mxu0 %v2425_v24 }
  0xab   :  { %1848 = vmatpush3.bf16.msra.mxu1 %v2511_v54 }
  0xac   :  { %1853 = vmatprep.subr.bf16.mxu1 %v2927_v38 }
 0x13e   :  { %v331_v60 = vpop.f32.mrb[0].mxu0 }
 0x13f   :  { %v333_v62 = vpop.f32.mrb[1].mxu0 }
 0x140   :  { %v335_v1 = vpop.f32.mrb[2].mxu0  ;;  %v334_v4 = vadd.f32 %v333_v62, %v137_v63 }
 0x141   :  { %v2555_v2 = vadd.f32 %v335_v1, %v133_v61  ;;  %v337_v3 = vpop.f32.mrb[3].mxu0  ;;  %v1807_v12 = vpop.f32.mrb[0].mxu1 }
 0x142   :  { %v2558_v5 = vadd.f32 %v337_v3, %v137_v63  ;;  %v2571_v15 = vadd.f32 %v1807_v12, %v2562_v6  ;;  %v404_v16 = vpop.f32.mrb[1].mxu1 }
 0x143   :  { %v1808_v18 = vpop.f32.mrb[2].mxu1 }
 0x144   :  { %v2576_v19 = vadd.f32 %v1808_v18, %v2562_v6  ;;  %v407_v20 = vpop.f32.mrb[3].mxu1 }
 0x145   :  { %v2579_v21 = vadd.f32 %v407_v20, %v2562_v6 }
 0x146   :  { %v341_v7 = vpop.f32.mrb[4].mxu0 }
 0x147   :  { %v2564_v8 = vadd.f32 %v341_v7, %v133_v61  ;;  %v343_v9 = vpop.f32.mrb[5].mxu0 }
 0x148   :  { %v2566_v10 = vadd.f32 %v343_v9, %v137_v63  ;;  %v345_v11 = vpop.f32.mrb[6].mxu0 }
 0x149   :  { %v2568_v13 = vadd.f32 %v345_v11, %v133_v61  ;;  %v347_v14 = vpop.f32.mrb[7].mxu0  ;;  %v1811_v35 = vpop.f32.mrb[4].mxu1 }
 0x14a   :  { %v2573_v17 = vadd.f32 %v347_v14, %v137_v63  ;;  %v2588_v55 = vadd.f32 %v1811_v35, %v2562_v6  ;;  %v420_v58 = vpop.f32.mrb[5].mxu1 }
 0x14b   :  { %v2593_v3 = vadd.f32 %v420_v58, %v2562_v6  ;;  %v1812_v7 = vpop.f32.mrb[6].mxu1 }
 0x14c   :  { %2930 = vst [vmem:[#allocation17_spill] sm:$0xff] %v2588_v55  ;;  %v2596_v9 = vadd.f32 %v1812_v7, %v2562_v6  ;;  %v423_v11 = vpop.f32.mrb[7].mxu1 }
 0x14d   :  { %v2599_v12 = vadd.f32 %v423_v11, %v2562_v6 }
 0x14e   :  { %v351_v22 = vpop.f32.mrb[8].mxu0  ;;  %2932 = vst [vmem:[#allocation19_spill] sm:$0xff] %v2596_v9 }
 0x14f   :  { %v2581_v23 = vadd.f32 %v351_v22, %v133_v61  ;;  %v353_v25 = vpop.f32.mrb[9].mxu0  ;;  %2933 = vst [vmem:[#allocation20_spill] sm:$0xff] %v2599_v12 }
 0x150   :  { %v2583_v28 = vadd.f32 %v353_v25, %v137_v63  ;;  %v355_v31 = vpop.f32.mrb[10].mxu0 }
 0x151   :  { %v2585_v43 = vadd.f32 %v355_v31, %v133_v61  ;;  %v357_v53 = vpop.f32.mrb[11].mxu0  ;;  %v491_v31 = vld [vmem:[%s2921_s4] sm:$0x7] }
 0x152   :  { %v2590_v1 = vadd.f32 %v357_v53, %v137_v63  ;;  %v2612_v7 = vrot.slane %v491_v31, %v132_v57  ;;  %v2614_v11 = vrot.slane %v491_v31, %v136_v59 }
 0x154   :  { %2931 = vst [vmem:[#allocation18_spill] sm:$0xff] %v2590_v1 }
 0x156   :  { %v361_v14 = vpop.f32.mrb[12].mxu0 }
 0x157   :  { %v2601_v18 = vadd.f32 %v361_v14, %v133_v61  ;;  %v363_v20 = vpop.f32.mrb[13].mxu0  ;;  %v332_v14 = vadd.f32 %v331_v60, %v133_v61 }
 0x158   :  { %v2603_v22 = vadd.f32 %v363_v20, %v137_v63  ;;  %v365_v25 = vpop.f32.mrb[14].mxu0 }
 0x159   :  { %2934 = vst [vmem:[#allocation21_spill] sm:$0xff] %v2601_v18  ;;  %v2608_v35 = vadd.f32 %v365_v25, %v133_v61  ;;  %v367_v53 = vpop.f32.mrb[15].mxu0 }
 0x15a   :  { %2935 = vst [vmem:[#allocation22_spill] sm:$0xff] %v2603_v22  ;;  %v2610_v58 = vadd.f32 %v367_v53, %v137_v63 }
 0x15b   :  { %2936 = vst [vmem:[#allocation23_spill] sm:$0xff] %v2608_v35 }
 0x15c   :  { %2937 = vst [vmem:[#allocation24_spill] sm:$0xff] %v2610_v58 }
 0x15e   :  { %v675_v0 = vpop.f32.mrb[16].mxu0 }
 0x15f   :  { %v676_v38 = vadd.f32 %v675_v0, %v2612_v7  ;;  %v677_v20 = vpop.f32.mrb[17].mxu0  ;;  %v2938_v0 = vsub.s32 2, %v2548_v56 }
 0x160   :  { %v678_v9 = vadd.f32 %v677_v20, %v2614_v11  ;;  %v679_v55 = vpop.f32.mrb[18].mxu0 }
 0x161   :  { %v722_v22 = vadd.f32 %v676_v38, %v332_v14  ;;  %v680_v18 = vpop.f32.mrb[19].mxu0  ;;  %v716_v58 = vpop.f32.mrb[8].mxu1  ;;  %v2620_v61 = vrot.slane %v491_v31, %v2938_v0  ;;  %v405_v55 = vadd.f32 %v404_v16, %v2562_v6  ;;  %v2939_v6 = vmov 0.0  }
 0x162   :  { %v723_v25 = vadd.f32 %v678_v9, %v334_v4  ;;  %v1831_v57 = vpop.f32.mrb[9].mxu1  ;;  %v2940_v16 = vmov 0  }
 0x163   :  { %v1671_v35 = vmul.f32 -1.442695, %v722_v22  ;;  %v719_v12 = vpop.f32.mrb[10].mxu1  ;;  %v717_v38 = vadd.f32 %v716_v58, %v2620_v61 }
 0x164   :  { %v1672_v53 = vmul.f32 -1.442695, %v723_v25  ;;  %v1832_v59 = vpop.f32.mrb[11].mxu1 }
 0x165   :  { %2082 = vpow2.f32 %v1671_v35 }
 0x166   :  { %2084 = vpow2.f32 %v1672_v53 }
 0x16f   :  { %v2083_v1 = vpop.eup %2082 }
 0x170   :  { %v730_v60 = vadd.f32 1.0, %v2083_v1  ;;  %v2085_v62 = vpop.eup %2084 }
 0x171   :  { %v731_v63 = vadd.f32 1.0, %v2085_v62 }
 0x172   :  { %2086 = vrcp.f32 %v730_v60 }
 0x173   :  { %2088 = vrcp.f32 %v731_v63 }
 0x17c   :  { %v2087_v4 = vpop.eup %2086 }
 0x17d   :  { %v736_v9 = vmul.f32 %v2087_v4, %v717_v38  ;;  %v2089_v12 = vpop.eup %2088 }
 0x17e   :  { %v739_v22 = vsub.f32 1.0, %v2089_v12  ;;  %v741_v14 = vmul.f32 0.0, %v2089_v12 }
 0x17f   :  { %v737_v18 = vadd.f32 %v736_v9, %v405_v55 }
 0x181   :  { %2090 = vtanh.f32 %v737_v18 }
 0x18b   :  { %v2091_v35 = vpop.eup %2090 }
 0x18c   :  { %v740_v1 = vmul.f32 %v2091_v35, %v739_v22 }
 0x18e   :  { %v2624_v20 = vadd.f32 %v741_v14, %v740_v1 }
 0x190   :  { %v746_v56 = vpack.c.bf16 %v2624_v20, %v2624_v20 }
 0x192   :  { %780 = vmatmul.mubr.bf16.vlgmr.msra.gmra.mrb[20].mxu0 %v746_v56  ;;  %1850 = vmatmul.mubr.bf16.vlgmr.msra.gmra.mrb[12].mxu1 %v746_v56 }
 0x193   :  { %854 = vmatpush1.bf16.msra.mxu0 %v2427_v26  ;;  %1854 = vmatpush3.bf16.msra.mxu1 %v2447_v36 }
 0x194   :  { %855 = vmatprep.subr.bf16.mxu0 %v2430_v27  ;;  %1855 = vmatprep.subr.bf16.mxu1 %v2939_v6 }
 0x195   :  { %885 = vmatprep.mubr.bf16.mxu0 %v2940_v16  ;;  %1869 = vmatprep.mubr.msk.bf16.mxu1 %vm2314_vm0, %v2939_v6 }
 0x197   :  { %856 = vmatpush1.bf16.msra.mxu0 %v2433_v29  ;;  %1856 = vmatpush3.bf16.msra.mxu1 %v2454_v39 }
 0x198   :  { %857 = vmatprep.subr.bf16.mxu0 %v2437_v30  ;;  %1857 = vmatprep.subr.bf16.mxu1 %v2939_v6 }
 0x19b   :  { %858 = vmatpush1.bf16.msra.mxu0 %v2440_v32  ;;  %1858 = vmatpush3.bf16.msra.mxu1 %v2466_v42 }
 0x19c   :  { %859 = vmatprep.subr.bf16.mxu0 %v2443_v33  ;;  %1859 = vmatprep.subr.bf16.mxu1 %v2939_v6 }
 0x19f   :  { %860 = vmatpush1.bf16.msra.mxu0 %v2445_v34  ;;  %1860 = vmatpush3.bf16.msra.mxu1 %v2477_v46 }
 0x1a0   :  { %861 = vmatprep.subr.bf16.mxu0 %v2449_v37  ;;  %1861 = vmatprep.subr.bf16.mxu1 %v2939_v6 }
 0x1a3   :  { %862 = vmatpush1.bf16.msra.mxu0 %v2460_v40  ;;  %1862 = vmatpush3.bf16.msra.mxu1 %v2489_v49 }
 0x1a4   :  { %863 = vmatprep.subr.bf16.mxu0 %v2463_v41  ;;  %1863 = vmatprep.subr.bf16.mxu1 %v2939_v6 }
 0x1a7   :  { %864 = vmatpush1.bf16.msra.mxu0 %v2470_v44  ;;  %1864 = vmatpush3.bf16.msra.mxu1 %v2498_v51 }
 0x1a8   :  { %865 = vmatprep.subr.bf16.mxu0 %v2474_v45  ;;  %1865 = vmatprep.subr.bf16.mxu1 %v2939_v6 }
 0x1ab   :  { %866 = vmatpush1.bf16.msra.mxu0 %v2483_v47  ;;  %1866 = vmatpush3.bf16.msra.mxu1 %v2504_v52 }
 0x1ac   :  { %867 = vmatprep.subr.bf16.mxu0 %v2486_v48  ;;  %1867 = vmatprep.subr.bf16.mxu1 %v2939_v6 }
 0x1af   :  { %868 = vmatpush1.bf16.msra.mxu0 %v2493_v50  ;;  %1868 = vmatpush3.bf16.msra.mxu1 %v2511_v54 }
 0x1b0   :  { %959 = vmatprep.subr.bf16.mxu0 %v2425_v24  ;;  %1873 = vmatprep.subr.bf16.mxu1 %v2939_v6 }
 0x265   :  { %v781_v31 = vpop.f32.mrb[20].mxu0  ;;  %v822_v58 = vpop.f32.mrb[12].mxu1 }
 0x266   :  { %v782_v25 = vadd.f32 %v781_v31, %v2612_v7  ;;  %v783_v53 = vpop.f32.mrb[21].mxu0  ;;  %v1851_v57 = vpop.f32.mrb[13].mxu1  ;;  %v823_v1 = vadd.f32 %v822_v58, %v2620_v61 }
 0x267   :  { %v784_v59 = vadd.f32 %v783_v53, %v2614_v11  ;;  %v785_v60 = vpop.f32.mrb[22].mxu0  ;;  %v825_v0 = vpop.f32.mrb[14].mxu1 }
 0x268   :  { %v828_v62 = vadd.f32 %v782_v25, %v2555_v2  ;;  %v786_v63 = vpop.f32.mrb[23].mxu0  ;;  %v1852_v38 = vpop.f32.mrb[15].mxu1 }
 0x269   :  { %v829_v4 = vadd.f32 %v784_v59, %v2558_v5 }
 0x26a   :  { %v1673_v55 = vmul.f32 -1.442695, %v828_v62 }
 0x26b   :  { %v1674_v9 = vmul.f32 -1.442695, %v829_v4 }
 0x26c   :  { %2092 = vpow2.f32 %v1673_v55 }
 0x26d   :  { %2094 = vpow2.f32 %v1674_v9 }
 0x276   :  { %v2093_v18 = vpop.eup %2092 }
 0x277   :  { %v836_v12 = vadd.f32 1.0, %v2093_v18  ;;  %v2095_v22 = vpop.eup %2094 }
 0x278   :  { %v837_v35 = vadd.f32 1.0, %v2095_v22 }
 0x279   :  { %2096 = vrcp.f32 %v836_v12 }
 0x27a   :  { %2098 = vrcp.f32 %v837_v35 }
 0x283   :  { %v2097_v14 = vpop.eup %2096 }
 0x284   :  { %v842_v56 = vmul.f32 %v2097_v14, %v823_v1  ;;  %v2099_v31 = vpop.eup %2098 }
 0x285   :  { %v845_v25 = vsub.f32 1.0, %v2099_v31  ;;  %v847_v57 = vmul.f32 %v2099_v31, %v2624_v20 }
 0x286   :  { %v843_v2 = vadd.f32 %v842_v56, %v2579_v21 }
 0x288   :  { %2100 = vtanh.f32 %v843_v2 }
 0x292   :  { %v2101_v5 = vpop.eup %2100 }
 0x293   :  { %v846_v53 = vmul.f32 %v2101_v5, %v845_v25 }
 0x295   :  { %v2670_v59 = vadd.f32 %v847_v57, %v846_v53 }
 0x297   :  { %v852_v60 = vpack.c.bf16 %v2670_v59, %v2670_v59 }
 0x299   :  { %886 = vmatmul.mubr.bf16.vlgmr.msra.gmra.mrb[24].mxu0 %v852_v60  ;;  %1870 = vmatmul.mubr.bf16.vlgmr.msra.gmra.mrb[16].mxu1 %v852_v60 }
 0x29a   :  { %960 = vmatpush1.bf16.msra.mxu0 %v2427_v26  ;;  %1874 = vmatpush3.bf16.msra.mxu1 %v2447_v36 }
 0x29b   :  { %961 = vmatprep.subr.bf16.mxu0 %v2430_v27  ;;  %1875 = vmatprep.subr.bf16.mxu1 %v2939_v6 }
 0x29c   :  { %991 = vmatprep.mubr.bf16.mxu0 %v2940_v16  ;;  %1889 = vmatprep.mubr.msk.bf16.mxu1 %vm2314_vm0, %v2939_v6 }
 0x29e   :  { %962 = vmatpush1.bf16.msra.mxu0 %v2433_v29  ;;  %1876 = vmatpush3.bf16.msra.mxu1 %v2454_v39 }
 0x29f   :  { %963 = vmatprep.subr.bf16.mxu0 %v2437_v30  ;;  %1877 = vmatprep.subr.bf16.mxu1 %v2939_v6 }
 0x2a2   :  { %964 = vmatpush1.bf16.msra.mxu0 %v2440_v32  ;;  %1878 = vmatpush3.bf16.msra.mxu1 %v2466_v42 }
 0x2a3   :  { %965 = vmatprep.subr.bf16.mxu0 %v2443_v33  ;;  %1879 = vmatprep.subr.bf16.mxu1 %v2939_v6 }
 0x2a6   :  { %966 = vmatpush1.bf16.msra.mxu0 %v2445_v34  ;;  %1880 = vmatpush3.bf16.msra.mxu1 %v2477_v46 }
 0x2a7   :  { %967 = vmatprep.subr.bf16.mxu0 %v2449_v37  ;;  %1881 = vmatprep.subr.bf16.mxu1 %v2939_v6 }
 0x2aa   :  { %968 = vmatpush1.bf16.msra.mxu0 %v2460_v40  ;;  %1882 = vmatpush3.bf16.msra.mxu1 %v2489_v49 }
 0x2ab   :  { %969 = vmatprep.subr.bf16.mxu0 %v2463_v41  ;;  %1883 = vmatprep.subr.bf16.mxu1 %v2939_v6 }
 0x2ae   :  { %970 = vmatpush1.bf16.msra.mxu0 %v2470_v44  ;;  %1884 = vmatpush3.bf16.msra.mxu1 %v2498_v51 }
 0x2af   :  { %971 = vmatprep.subr.bf16.mxu0 %v2474_v45  ;;  %1885 = vmatprep.subr.bf16.mxu1 %v2939_v6 }
 0x2b2   :  { %972 = vmatpush1.bf16.msra.mxu0 %v2483_v47  ;;  %1886 = vmatpush3.bf16.msra.mxu1 %v2504_v52 }
 0x2b3   :  { %973 = vmatprep.subr.bf16.mxu0 %v2486_v48  ;;  %1887 = vmatprep.subr.bf16.mxu1 %v2939_v6 }
 0x2b6   :  { %974 = vmatpush1.bf16.msra.mxu0 %v2493_v50  ;;  %1888 = vmatpush3.bf16.msra.mxu1 %v2511_v54 }
 0x2b7   :  { %1065 = vmatprep.subr.bf16.mxu0 %v2425_v24  ;;  %1893 = vmatprep.subr.bf16.mxu1 %v2939_v6 }
 0x36c   :  { %v887_v21 = vpop.f32.mrb[24].mxu0  ;;  %v928_v20 = vpop.f32.mrb[16].mxu1 }
 0x36d   :  { %v888_v58 = vadd.f32 %v887_v21, %v2612_v7  ;;  %v889_v0 = vpop.f32.mrb[25].mxu0  ;;  %v1871_v62 = vpop.f32.mrb[17].mxu1  ;;  %v929_v31 = vadd.f32 %v928_v20, %v2620_v61 }
 0x36e   :  { %v890_v63 = vadd.f32 %v889_v0, %v2614_v11  ;;  %v891_v38 = vpop.f32.mrb[26].mxu0  ;;  %v931_v4 = vpop.f32.mrb[18].mxu1 }
 0x36f   :  { %v934_v55 = vadd.f32 %v888_v58, %v2564_v8  ;;  %v892_v9 = vpop.f32.mrb[27].mxu0  ;;  %v1872_v18 = vpop.f32.mrb[19].mxu1 }
 0x370   :  { %v935_v12 = vadd.f32 %v890_v63, %v2566_v10 }
 0x371   :  { %v1675_v22 = vmul.f32 -1.442695, %v934_v55 }
 0x372   :  { %v1676_v35 = vmul.f32 -1.442695, %v935_v12 }
 0x373   :  { %2102 = vpow2.f32 %v1675_v22 }
 0x374   :  { %2104 = vpow2.f32 %v1676_v35 }
 0x37d   :  { %v2103_v1 = vpop.eup %2102 }
 0x37e   :  { %v942_v14 = vadd.f32 1.0, %v2103_v1  ;;  %v2105_v56 = vpop.eup %2104 }
 0x37f   :  { %v943_v2 = vadd.f32 1.0, %v2105_v56 }
 0x380   :  { %2106 = vrcp.f32 %v942_v14 }
 0x381   :  { %2108 = vrcp.f32 %v943_v2 }
 0x38a   :  { %v2107_v25 = vpop.eup %2106 }
 0x38b   :  { %v948_v5 = vmul.f32 %v2107_v25, %v929_v31  ;;  %v2109_v53 = vpop.eup %2108 }
 0x38c   :  { %v951_v57 = vsub.f32 1.0, %v2109_v53  ;;  %v953_v21 = vmul.f32 %v2109_v53, %v2670_v59 }
 0x38d   :  { %v949_v8 = vadd.f32 %v948_v5, %v2571_v15 }
 0x38f   :  { %2110 = vtanh.f32 %v949_v8 }
 0x399   :  { %v2111_v10 = vpop.eup %2110 }
 0x39a   :  { %v952_v60 = vmul.f32 %v2111_v10, %v951_v57 }
 0x39c   :  { %v2716_v58 = vadd.f32 %v953_v21, %v952_v60 }
 0x39e   :  { %v958_v0 = vpack.c.bf16 %v2716_v58, %v2716_v58 }
 0x3a0   :  { %992 = vmatmul.mubr.bf16.vlgmr.msra.gmra.mrb[28].mxu0 %v958_v0  ;;  %1890 = vmatmul.mubr.bf16.vlgmr.msra.gmra.mrb[20].mxu1 %v958_v0 }
 0x3a1   :  { %1066 = vmatpush1.bf16.msra.mxu0 %v2427_v26  ;;  %1894 = vmatpush3.bf16.msra.mxu1 %v2447_v36 }
 0x3a2   :  { %1067 = vmatprep.subr.bf16.mxu0 %v2430_v27  ;;  %1895 = vmatprep.subr.bf16.mxu1 %v2939_v6 }
 0x3a3   :  { %1097 = vmatprep.mubr.bf16.mxu0 %v2940_v16  ;;  %1909 = vmatprep.mubr.msk.bf16.mxu1 %vm2314_vm0, %v2939_v6 }
 0x3a5   :  { %1068 = vmatpush1.bf16.msra.mxu0 %v2433_v29  ;;  %1896 = vmatpush3.bf16.msra.mxu1 %v2454_v39 }
 0x3a6   :  { %1069 = vmatprep.subr.bf16.mxu0 %v2437_v30  ;;  %1897 = vmatprep.subr.bf16.mxu1 %v2939_v6 }
 0x3a9   :  { %1070 = vmatpush1.bf16.msra.mxu0 %v2440_v32  ;;  %1898 = vmatpush3.bf16.msra.mxu1 %v2466_v42 }
 0x3aa   :  { %1071 = vmatprep.subr.bf16.mxu0 %v2443_v33  ;;  %1899 = vmatprep.subr.bf16.mxu1 %v2939_v6 }
 0x3ad   :  { %1072 = vmatpush1.bf16.msra.mxu0 %v2445_v34  ;;  %1900 = vmatpush3.bf16.msra.mxu1 %v2477_v46 }
 0x3ae   :  { %1073 = vmatprep.subr.bf16.mxu0 %v2449_v37  ;;  %1901 = vmatprep.subr.bf16.mxu1 %v2939_v6 }
 0x3b1   :  { %1074 = vmatpush1.bf16.msra.mxu0 %v2460_v40  ;;  %1902 = vmatpush3.bf16.msra.mxu1 %v2489_v49 }
 0x3b2   :  { %1075 = vmatprep.subr.bf16.mxu0 %v2463_v41  ;;  %1903 = vmatprep.subr.bf16.mxu1 %v2939_v6 }
 0x3b5   :  { %1076 = vmatpush1.bf16.msra.mxu0 %v2470_v44  ;;  %1904 = vmatpush3.bf16.msra.mxu1 %v2498_v51 }
 0x3b6   :  { %1077 = vmatprep.subr.bf16.mxu0 %v2474_v45  ;;  %1905 = vmatprep.subr.bf16.mxu1 %v2939_v6 }
 0x3b9   :  { %1078 = vmatpush1.bf16.msra.mxu0 %v2483_v47  ;;  %1906 = vmatpush3.bf16.msra.mxu1 %v2504_v52 }
 0x3ba   :  { %1079 = vmatprep.subr.bf16.mxu0 %v2486_v48  ;;  %1907 = vmatprep.subr.bf16.mxu1 %v2939_v6 }
 0x3bd   :  { %1080 = vmatpush1.bf16.msra.mxu0 %v2493_v50  ;;  %1908 = vmatpush3.bf16.msra.mxu1 %v2511_v54 }
 0x3be   :  { %1171 = vmatprep.subr.bf16.mxu0 %v2425_v24  ;;  %1913 = vmatprep.subr.bf16.mxu1 %v2939_v6 }
 0x473   :  { %v993_v15 = vpop.f32.mrb[28].mxu0  ;;  %v1034_v59 = vpop.f32.mrb[20].mxu1 }
 0x474   :  { %v994_v20 = vadd.f32 %v993_v15, %v2612_v7  ;;  %v995_v62 = vpop.f32.mrb[29].mxu0  ;;  %v1891_v63 = vpop.f32.mrb[21].mxu1  ;;  %v1035_v25 = vadd.f32 %v1034_v59, %v2620_v61 }
 0x475   :  { %v996_v38 = vadd.f32 %v995_v62, %v2614_v11  ;;  %v997_v4 = vpop.f32.mrb[30].mxu0  ;;  %v1037_v55 = vpop.f32.mrb[22].mxu1 }
 0x476   :  { %v1040_v9 = vadd.f32 %v994_v20, %v2568_v13  ;;  %v998_v18 = vpop.f32.mrb[31].mxu0  ;;  %v1892_v12 = vpop.f32.mrb[23].mxu1 }
 0x477   :  { %v1041_v22 = vadd.f32 %v996_v38, %v2573_v17 }
 0x478   :  { %v1677_v35 = vmul.f32 -1.442695, %v1040_v9 }
 0x479   :  { %v1678_v1 = vmul.f32 -1.442695, %v1041_v22 }
 0x47a   :  { %2112 = vpow2.f32 %v1677_v35 }
 0x47b   :  { %2114 = vpow2.f32 %v1678_v1 }
 0x484   :  { %v2113_v14 = vpop.eup %2112 }
 0x485   :  { %v1048_v56 = vadd.f32 1.0, %v2113_v14  ;;  %v2115_v2 = vpop.eup %2114 }
 0x486   :  { %v1049_v31 = vadd.f32 1.0, %v2115_v2 }
 0x487   :  { %2116 = vrcp.f32 %v1048_v56 }
 0x488   :  { %2118 = vrcp.f32 %v1049_v31 }
 0x491   :  { %v2117_v5 = vpop.eup %2116 }
 0x492   :  { %v1054_v8 = vmul.f32 %v2117_v5, %v1035_v25  ;;  %v2119_v53 = vpop.eup %2118 }
 0x493   :  { %v1057_v57 = vsub.f32 1.0, %v2119_v53  ;;  %v1059_v60 = vmul.f32 %v2119_v53, %v2716_v58  ;;  %v2827_v53 = vld [vmem:[#allocation9 + $0x34] ss:$12 sps:$4 sm:$0xff]  }
 0x494   :  { %v1055_v13 = vadd.f32 %v1054_v8, %v2576_v19  ;;  %v2812_v8 = vld [vmem:[#allocation9] ss:$12 sps:$4 sm:$0xff]  }
 0x496   :  { %2120 = vtanh.f32 %v1055_v13  ;;  %v2823_v13 = vld [vmem:[#allocation9 + $0x18] ss:$12 sps:$4 sm:$0xff]  }
 0x4a0   :  { %v2121_v17 = vpop.eup %2120 }
 0x4a1   :  { %v1058_v10 = vmul.f32 %v2121_v17, %v1057_v57 }
 0x4a3   :  { %v2762_v21 = vadd.f32 %v1059_v60, %v1058_v10 }
 0x4a5   :  { %v1064_v0 = vpack.c.bf16 %v2762_v21, %v2762_v21 }
 0x4a7   :  { %1098 = vmatmul.mubr.bf16.vlgmr.msra.gmra.mrb[32].mxu0 %v1064_v0  ;;  %1910 = vmatmul.mubr.bf16.vlgmr.msra.gmra.mrb[24].mxu1 %v1064_v0 }
 0x4a8   :  { %1172 = vmatpush1.bf16.msra.mxu0 %v2427_v26  ;;  %1914 = vmatpush3.bf16.msra.mxu1 %v2447_v36 }
 0x4a9   :  { %1173 = vmatprep.subr.bf16.mxu0 %v2430_v27  ;;  %1915 = vmatprep.subr.bf16.mxu1 %v2939_v6 }
 0x4aa   :  { %1203 = vmatprep.mubr.bf16.mxu0 %v2940_v16  ;;  %1929 = vmatprep.mubr.msk.bf16.mxu1 %vm2314_vm0, %v2939_v6 }
 0x4ac   :  { %1174 = vmatpush1.bf16.msra.mxu0 %v2433_v29  ;;  %1916 = vmatpush3.bf16.msra.mxu1 %v2454_v39 }
 0x4ad   :  { %1175 = vmatprep.subr.bf16.mxu0 %v2437_v30  ;;  %1917 = vmatprep.subr.bf16.mxu1 %v2939_v6 }
 0x4b0   :  { %1176 = vmatpush1.bf16.msra.mxu0 %v2440_v32  ;;  %1918 = vmatpush3.bf16.msra.mxu1 %v2466_v42 }
 0x4b1   :  { %1177 = vmatprep.subr.bf16.mxu0 %v2443_v33  ;;  %1919 = vmatprep.subr.bf16.mxu1 %v2939_v6 }
 0x4b4   :  { %1178 = vmatpush1.bf16.msra.mxu0 %v2445_v34  ;;  %1920 = vmatpush3.bf16.msra.mxu1 %v2477_v46 }
 0x4b5   :  { %1179 = vmatprep.subr.bf16.mxu0 %v2449_v37  ;;  %1921 = vmatprep.subr.bf16.mxu1 %v2939_v6 }
 0x4b8   :  { %1180 = vmatpush1.bf16.msra.mxu0 %v2460_v40  ;;  %1922 = vmatpush3.bf16.msra.mxu1 %v2489_v49 }
 0x4b9   :  { %1181 = vmatprep.subr.bf16.mxu0 %v2463_v41  ;;  %1923 = vmatprep.subr.bf16.mxu1 %v2939_v6 }
 0x4bc   :  { %1182 = vmatpush1.bf16.msra.mxu0 %v2470_v44  ;;  %1924 = vmatpush3.bf16.msra.mxu1 %v2498_v51 }
 0x4bd   :  { %1183 = vmatprep.subr.bf16.mxu0 %v2474_v45  ;;  %1925 = vmatprep.subr.bf16.mxu1 %v2939_v6 }
 0x4c0   :  { %1184 = vmatpush1.bf16.msra.mxu0 %v2483_v47  ;;  %1926 = vmatpush3.bf16.msra.mxu1 %v2504_v52 }
 0x4c1   :  { %1185 = vmatprep.subr.bf16.mxu0 %v2486_v48  ;;  %1927 = vmatprep.subr.bf16.mxu1 %v2939_v6 }
 0x4c4   :  { %1186 = vmatpush1.bf16.msra.mxu0 %v2493_v50  ;;  %1928 = vmatpush3.bf16.msra.mxu1 %v2511_v54 }
 0x4c5   :  { %1277 = vmatprep.subr.bf16.mxu0 %v2425_v24  ;;  %1933 = vmatprep.subr.bf16.mxu1 %v2939_v6 }
 0x57a   :  { %v1099_v26 = vpop.f32.mrb[32].mxu0  ;;  %v1140_v27 = vpop.f32.mrb[24].mxu1 }
 0x57b   :  { %v1100_v29 = vadd.f32 %v1099_v26, %v2612_v7  ;;  %v1101_v30 = vpop.f32.mrb[33].mxu0  ;;  %v1911_v19 = vpop.f32.mrb[25].mxu1  ;;  %v1141_v22 = vadd.f32 %v1140_v27, %v2620_v61 }
 0x57c   :  { %v1102_v58 = vadd.f32 %v1101_v30, %v2614_v11  ;;  %v1103_v15 = vpop.f32.mrb[34].mxu0  ;;  %v1143_v59 = vpop.f32.mrb[26].mxu1 }
 0x57d   :  { %v1146_v20 = vadd.f32 %v1100_v29, %v2581_v23  ;;  %v1104_v62 = vpop.f32.mrb[35].mxu0  ;;  %v1912_v63 = vpop.f32.mrb[27].mxu1  ;;  %v2167_v15 = vld [vmem:[#allocation9 + $0x8] ss:$12 sps:$4 sm:$0xff]   ;;  %v2168_v59 = vld [vmem:[#allocation9 + $0x20] ss:$12 sps:$4 sm:$0xff]  }
 0x57e   :  { %v1147_v38 = vadd.f32 %v1102_v58, %v2583_v28  ;;  %v2170_v62 = vld [vmem:[#allocation9 + $0x38] ss:$12 sps:$4 sm:$0xff]  }
 0x57f   :  { %v1679_v4 = vmul.f32 -1.442695, %v1146_v20  ;;  %v2169_v20 = vld [vmem:[#allocation9 + $0x30] ss:$12 sps:$4 sm:$0xff]   ;;  %v2171_v63 = vld [vmem:[#allocation9 + $0x4c] ss:$12 sps:$4 sm:$0xff]  }
 0x580   :  { %v1680_v24 = vmul.f32 -1.442695, %v1147_v38  ;;  %v2173_v38 = vld [vmem:[#allocation9 + $0x50] ss:$12 sps:$4 sm:$0xff]  }
 0x581   :  { %2122 = vpow2.f32 %v1679_v4  ;;  %v2174_v4 = vld [vmem:[#allocation9 + $0x64] ss:$12 sps:$4 sm:$0xff]  }
 0x582   :  { %2124 = vpow2.f32 %v1680_v24  ;;  %v2175_v24 = vld [vmem:[#allocation9 + $0x60] ss:$12 sps:$4 sm:$0xff]  }
 0x58b   :  { %v2123_v55 = vpop.eup %2122 }
 0x58c   :  { %v1154_v9 = vadd.f32 1.0, %v2123_v55  ;;  %v2125_v18 = vpop.eup %2124  ;;  %v2176_v55 = vld [vmem:[#allocation9 + $0x68] ss:$12 sps:$4 sm:$0xff]  }
 0x58d   :  { %v1155_v12 = vadd.f32 1.0, %v2125_v18  ;;  %v2178_v18 = vld [vmem:[#allocation9 + $0x78] ss:$12 sps:$4 sm:$0xff]  }
 0x58e   :  { %2126 = vrcp.f32 %v1154_v9  ;;  %v2177_v9 = vld [vmem:[#allocation9 + $0x7c] ss:$12 sps:$4 sm:$0xff]  }
 0x58f   :  { %2128 = vrcp.f32 %v1155_v12  ;;  %v2179_v12 = vld [vmem:[#allocation9 + $0x80] ss:$12 sps:$4 sm:$0xff]  }
 0x598   :  { %v2127_v35 = vpop.eup %2126 }
 0x599   :  { %v1160_v1 = vmul.f32 %v2127_v35, %v1141_v22  ;;  %v2129_v14 = vpop.eup %2128  ;;  %v2180_v22 = vld [vmem:[#allocation9 + $0x94] ss:$12 sps:$4 sm:$0xff]   ;;  %v2181_v35 = vld [vmem:[#allocation9 + $0x90] ss:$12 sps:$4 sm:$0xff]  }
 0x59a   :  { %v1163_v56 = vsub.f32 1.0, %v2129_v14  ;;  %v1165_v31 = vmul.f32 %v2129_v14, %v2762_v21  ;;  %v2942_v21 = vld [vmem:[#allocation20_spill] sm:$0xff]  ;;  %v2184_v14 = vld [vmem:[#allocation9 + $0xa8] ss:$12 sps:$4 sm:$0xff]  }
 0x59b   :  { %v1161_v23 = vadd.f32 %v1160_v1, %v2593_v3  ;;  %v2816_v3 = vld [vmem:[#allocation9 + $0x1c] ss:$12 sps:$4 sm:$0xff]   ;;  %v2182_v1 = vld [vmem:[#allocation9 + $0x98] ss:$12 sps:$4 sm:$0xff]  }
 0x59d   :  { %2130 = vtanh.f32 %v1161_v23  ;;  %v2183_v23 = vld [vmem:[#allocation9 + $0xac] ss:$12 sps:$4 sm:$0xff]  }
 0x5a7   :  { %v2131_v28 = vpop.eup %2130 }
 0x5a8   :  { %v1164_v2 = vmul.f32 %v2131_v28, %v1163_v56  ;;  %v2185_v56 = vld [vmem:[#allocation9 + $0xb0] ss:$12 sps:$4 sm:$0xff]  }
 0x5aa   :  { %v2808_v25 = vadd.f32 %v1165_v31, %v1164_v2 }
 0x5ac   :  { %v1170_v5 = vpack.c.bf16 %v2808_v25, %v2808_v25 }
 0x5ae   :  { %1204 = vmatmul.mubr.bf16.vlgmr.msra.gmra.mrb[36].mxu0 %v1170_v5  ;;  %1930 = vmatmul.mubr.bf16.vlgmr.msra.gmra.mrb[28].mxu1 %v1170_v5 }
 0x5af   :  { %1278 = vmatpush1.bf16.msra.mxu0 %v2812_v8  ;;  %1934 = vmatpush3.bf16.msra.mxu1 %v2447_v36 }
 0x5b0   :  { %1279 = vmatprep.subr.bf16.mxu0 %v2816_v3  ;;  %1935 = vmatprep.subr.bf16.mxu1 %v2939_v6 }
 0x5b1   :  { %1309 = vmatprep.mubr.bf16.mxu0 %v2940_v16  ;;  %1949 = vmatprep.mubr.msk.bf16.mxu1 %vm2314_vm0, %v2939_v6 }
 0x5b3   :  { %1280 = vmatpush1.bf16.msra.mxu0 %v2823_v13  ;;  %1936 = vmatpush3.bf16.msra.mxu1 %v2454_v39 }
 0x5b4   :  { %1281 = vmatprep.subr.bf16.mxu0 %v2827_v53  ;;  %1937 = vmatprep.subr.bf16.mxu1 %v2939_v6 }
 0x5b7   :  { %1282 = vmatpush1.bf16.msra.mxu0 %v2440_v32  ;;  %1938 = vmatpush3.bf16.msra.mxu1 %v2466_v42  ;;  %v2166_v32 = vld [vmem:[#allocation9 + $0x4] ss:$12 sps:$4 sm:$0xff]  }
 0x5b8   :  { %1283 = vmatprep.subr.bf16.mxu0 %v2443_v33  ;;  %1939 = vmatprep.subr.bf16.mxu1 %v2939_v6 }
 0x5bb   :  { %1284 = vmatpush1.bf16.msra.mxu0 %v2445_v34  ;;  %1940 = vmatpush3.bf16.msra.mxu1 %v2477_v46 }
 0x5bc   :  { %1285 = vmatprep.subr.bf16.mxu0 %v2449_v37  ;;  %1941 = vmatprep.subr.bf16.mxu1 %v2939_v6 }
 0x5bf   :  { %1286 = vmatpush1.bf16.msra.mxu0 %v2460_v40  ;;  %1942 = vmatpush3.bf16.msra.mxu1 %v2489_v49 }
 0x5c0   :  { %1287 = vmatprep.subr.bf16.mxu0 %v2463_v41  ;;  %1943 = vmatprep.subr.bf16.mxu1 %v2939_v6 }
 0x5c3   :  { %1288 = vmatpush1.bf16.msra.mxu0 %v2470_v44  ;;  %1944 = vmatpush3.bf16.msra.mxu1 %v2498_v51 }
 0x5c4   :  { %1289 = vmatprep.subr.bf16.mxu0 %v2474_v45  ;;  %1945 = vmatprep.subr.bf16.mxu1 %v2939_v6 }
 0x5c7   :  { %1290 = vmatpush1.bf16.msra.mxu0 %v2483_v47  ;;  %1946 = vmatpush3.bf16.msra.mxu1 %v2504_v52  ;;  %v2941_v47 = vld [vmem:[#allocation18_spill] sm:$0xff] }
 0x5c8   :  { %1291 = vmatprep.subr.bf16.mxu0 %v2486_v48  ;;  %1947 = vmatprep.subr.bf16.mxu1 %v2939_v6 }
 0x5cb   :  { %1292 = vmatpush1.bf16.msra.mxu0 %v2493_v50  ;;  %1948 = vmatpush3.bf16.msra.mxu1 %v2511_v54 }
 0x5cc   :  { %1383 = vmatprep.subr.bf16.mxu0 %v2166_v32  ;;  %1953 = vmatprep.subr.bf16.mxu1 %v2939_v6 }
 0x681   :  { %v1205_v33 = vpop.f32.mrb[36].mxu0  ;;  %v1246_v34 = vpop.f32.mrb[28].mxu1 }
 0x682   :  { %v1206_v36 = vadd.f32 %v1205_v33, %v2612_v7  ;;  %v1207_v37 = vpop.f32.mrb[37].mxu0  ;;  %v1931_v39 = vpop.f32.mrb[29].mxu1  ;;  %v1247_v17 = vadd.f32 %v1246_v34, %v2620_v61 }
 0x683   :  { %v1208_v40 = vadd.f32 %v1207_v37, %v2614_v11  ;;  %v1209_v41 = vpop.f32.mrb[38].mxu0  ;;  %v1249_v42 = vpop.f32.mrb[30].mxu1 }
 0x684   :  { %v1252_v44 = vadd.f32 %v1206_v36, %v2585_v43  ;;  %v1210_v45 = vpop.f32.mrb[39].mxu0  ;;  %v1932_v46 = vpop.f32.mrb[31].mxu1  ;;  %v2944_v36 = vld [vmem:[#allocation22_spill] sm:$0xff] }
 0x685   :  { %v1253_v48 = vadd.f32 %v1208_v40, %v2941_v47 }
 0x686   :  { %v1681_v49 = vmul.f32 -1.442695, %v1252_v44 }
 0x687   :  { %v1682_v50 = vmul.f32 -1.442695, %v1253_v48 }
 0x688   :  { %2132 = vpow2.f32 %v1681_v49  ;;  %v2945_v49 = vld [vmem:[#allocation17_spill] sm:$0xff] }
 0x689   :  { %2134 = vpow2.f32 %v1682_v50 }
 0x692   :  { %v2133_v51 = vpop.eup %2132 }
 0x693   :  { %v1260_v52 = vadd.f32 1.0, %v2133_v51  ;;  %v2135_v54 = vpop.eup %2134 }
 0x694   :  { %v1261_v57 = vadd.f32 1.0, %v2135_v54 }
 0x695   :  { %2136 = vrcp.f32 %v1260_v52 }
 0x696   :  { %2138 = vrcp.f32 %v1261_v57 }
 0x69f   :  { %v2137_v10 = vpop.eup %2136 }
 0x6a0   :  { %v1266_v60 = vmul.f32 %v2137_v10, %v1247_v17  ;;  %v2139_v0 = vpop.eup %2138 }
 0x6a1   :  { %v1269_v26 = vsub.f32 1.0, %v2139_v0  ;;  %v1271_v30 = vmul.f32 %v2139_v0, %v2808_v25  ;;  %v2076_v0 = vld [vmem:[#allocation10 + $0x10] sm:$0xff]  }
 0x6a2   :  { %v1267_v43 = vadd.f32 %v1266_v60, %v2942_v21  ;;  %v2074_v21 = vld [vmem:[#allocation10] sm:$0xff]  }
 0x6a4   :  { %2140 = vtanh.f32 %v1267_v43  ;;  %v2075_v43 = vld [vmem:[#allocation10 + $0x8] sm:$0xff]  }
 0x6ae   :  { %v2141_v27 = vpop.eup %2140 }
 0x6af   :  { %v1270_v29 = vmul.f32 %v2141_v27, %v1269_v26  ;;  %v2077_v26 = vld [vmem:[#allocation10 + $0x18] sm:$0xff]   ;;  %v2078_v27 = vld [vmem:[#allocation10 + $0x20] sm:$0xff]  }
 0x6b1   :  { %v2861_v19 = vadd.f32 %v1271_v30, %v1270_v29  ;;  %v2079_v29 = vld [vmem:[#allocation10 + $0x28] sm:$0xff]   ;;  %v2080_v30 = vld [vmem:[#allocation10 + $0x30] sm:$0xff]  }
 0x6b3   :  { %v1276_v58 = vpack.c.bf16 %v2861_v19, %v2861_v19 }
 0x6b5   :  { %1310 = vmatmul.mubr.bf16.vlgmr.msra.gmra.mrb[40].mxu0 %v1276_v58  ;;  %1950 = vmatmul.mubr.bf16.vlgmr.msra.gmra.mrb[32].mxu1 %v1276_v58 }
 0x6b6   :  { %1384 = vmatpush1.bf16.msra.mxu0 %v2812_v8  ;;  %1954 = vmatpush3.bf16.msra.mxu1 %v2167_v15 }
 0x6b7   :  { %1385 = vmatprep.subr.bf16.mxu0 %v2816_v3  ;;  %1955 = vmatprep.subr.bf16.mxu1 %v2939_v6 }
 0x6b8   :  { %1415 = vmatprep.mubr.bf16.mxu0 %v2940_v16  ;;  %1969 = vmatprep.mubr.msk.bf16.mxu1 %vm2314_vm0, %v2939_v6  ;;  %v2172_v16 = vld [vmem:[#allocation9 + $0x48] ss:$12 sps:$4 sm:$0xff]  }
 0x6ba   :  { %1386 = vmatpush1.bf16.msra.mxu0 %v2823_v13  ;;  %1956 = vmatpush3.bf16.msra.mxu1 %v2168_v59 }
 0x6bb   :  { %1387 = vmatprep.subr.bf16.mxu0 %v2827_v53  ;;  %1957 = vmatprep.subr.bf16.mxu1 %v2939_v6  ;;  %v2943_v53 = vld [vmem:[#allocation21_spill] sm:$0xff] }
 0x6be   :  { %1388 = vmatpush1.bf16.msra.mxu0 %v2169_v20  ;;  %1958 = vmatpush3.bf16.msra.mxu1 %v2170_v62 }
 0x6bf   :  { %1389 = vmatprep.subr.bf16.mxu0 %v2171_v63  ;;  %1959 = vmatprep.subr.bf16.mxu1 %v2939_v6 }
 0x6c2   :  { %1390 = vmatpush1.bf16.msra.mxu0 %v2172_v16  ;;  %1960 = vmatpush3.bf16.msra.mxu1 %v2173_v38 }
 0x6c3   :  { %1391 = vmatprep.subr.bf16.mxu0 %v2174_v4  ;;  %1961 = vmatprep.subr.bf16.mxu1 %v2939_v6  ;;  %v2946_v4 = vld [vmem:[#allocation23_spill] sm:$0xff] }
 0x6c6   :  { %1392 = vmatpush1.bf16.msra.mxu0 %v2175_v24  ;;  %1962 = vmatpush3.bf16.msra.mxu1 %v2176_v55 }
 0x6c7   :  { %1393 = vmatprep.subr.bf16.mxu0 %v2177_v9  ;;  %1963 = vmatprep.subr.bf16.mxu1 %v2939_v6 }
 0x6ca   :  { %1394 = vmatpush1.bf16.msra.mxu0 %v2178_v18  ;;  %1964 = vmatpush3.bf16.msra.mxu1 %v2179_v12  ;;  %v2947_v18 = vld [vmem:[#allocation24_spill] sm:$0xff] }
 0x6cb   :  { %1395 = vmatprep.subr.bf16.mxu0 %v2180_v22  ;;  %1965 = vmatprep.subr.bf16.mxu1 %v2939_v6 }
 0x6ce   :  { %1396 = vmatpush1.bf16.msra.mxu0 %v2181_v35  ;;  %1966 = vmatpush3.bf16.msra.mxu1 %v2182_v1 }
 0x6cf   :  { %1397 = vmatprep.subr.bf16.mxu0 %v2183_v23  ;;  %1967 = vmatprep.subr.bf16.mxu1 %v2939_v6 }
 0x6d2   :  { %1398 = vmatpush1.bf16.msra.mxu0 %v2184_v14  ;;  %1968 = vmatpush3.bf16.msra.mxu1 %v2185_v56 }
 0x6d3   :  { %1973 = vmatprep.subr.bf16.mxu0 %v2939_v6 }
 0x788   :  { %v1311_v28 = vpop.f32.mrb[40].mxu0  ;;  %v1352_v2 = vpop.f32.mrb[32].mxu1 }
 0x789   :  { %v1312_v31 = vadd.f32 %v1311_v28, %v2612_v7  ;;  %v1313_v25 = vpop.f32.mrb[41].mxu0  ;;  %v1951_v5 = vpop.f32.mrb[33].mxu1  ;;  %v1353_v46 = vadd.f32 %v1352_v2, %v2620_v61  ;;  %v2948_v28 = vld [vmem:[#allocation19_spill] sm:$0xff] }
 0x78a   :  { %v1314_v8 = vadd.f32 %v1313_v25, %v2614_v11  ;;  %v1315_v3 = vpop.f32.mrb[42].mxu0  ;;  %v1355_v13 = vpop.f32.mrb[34].mxu1 }
 0x78b   :  { %v1358_v32 = vadd.f32 %v1312_v31, %v2943_v53  ;;  %v1316_v33 = vpop.f32.mrb[43].mxu0  ;;  %v1952_v34 = vpop.f32.mrb[35].mxu1 }
 0x78c   :  { %v1359_v37 = vadd.f32 %v1314_v8, %v2944_v36 }
 0x78d   :  { %v1683_v39 = vmul.f32 -1.442695, %v1358_v32  ;;  %v1687_v32 = vld [vmem:[%s2923_s6] ss:$0 sm:$0xff] }
 0x78e   :  { %v1684_v40 = vmul.f32 -1.442695, %v1359_v37 }
 0x78f   :  { %2142 = vpow2.f32 %v1683_v39 }
 0x790   :  { %2144 = vpow2.f32 %v1684_v40 }
 0x799   :  { %v2143_v41 = vpop.eup %2142 }
 0x79a   :  { %v1366_v42 = vadd.f32 1.0, %v2143_v41  ;;  %v2145_v44 = vpop.eup %2144 }
 0x79b   :  { %v1367_v45 = vadd.f32 1.0, %v2145_v44 }
 0x79c   :  { %2146 = vrcp.f32 %v1366_v42 }
 0x79d   :  { %2148 = vrcp.f32 %v1367_v45 }
 0x7a6   :  { %v2147_v47 = vpop.eup %2146 }
 0x7a7   :  { %v1372_v48 = vmul.f32 %v2147_v47, %v1353_v46  ;;  %v2149_v51 = vpop.eup %2148 }
 0x7a8   :  { %v1375_v52 = vsub.f32 1.0, %v2149_v51  ;;  %v1377_v17 = vmul.f32 %v2149_v51, %v2861_v19  ;;  %v2081_v19 = vld [vmem:[#allocation10 + $0x38] sm:$0xff]  }
 0x7a9   :  { %v1373_v50 = vadd.f32 %v1372_v48, %v2945_v49 }
 0x7ab   :  { %2150 = vtanh.f32 %v1373_v50 }
 0x7b5   :  { %v2151_v54 = vpop.eup %2150 }
 0x7b6   :  { %v1376_v57 = vmul.f32 %v2151_v54, %v1375_v52 }
 0x7b8   :  { %v1378_v10 = vadd.f32 %v1377_v17, %v1376_v57 }
 0x7ba   :  { %v1382_v60 = vpack.c.bf16 %v1378_v10, %v1378_v10 }
 0x7bc   :  { %1416 = vmatmul.mubr.bf16.vlgmr.msra.gmra.mrb[44].mxu0 %v1382_v60  ;;  %1970 = vmatmul.mubr.bf16.vlgmr.msra.gmra.mrb[36].mxu1 %v1382_v60 }
 0x7bd   :  { %1989 = vmatprep.mubr.msk.bf16.mxu0 %vm2314_vm0, %v2939_v6  ;;  %1974 = vmatpush3.bf16.msra.mxu0 %v2074_v21 }
 0x7be   :  { %1975 = vmatprep.subr.bf16.mxu0 %v2939_v6 }
 0x7c1   :  { %1976 = vmatpush3.bf16.msra.mxu0 %v2075_v43 }
 0x7c2   :  { %1977 = vmatprep.subr.bf16.mxu0 %v2939_v6 }
 0x7c5   :  { %1978 = vmatpush3.bf16.msra.mxu0 %v2076_v0 }
 0x7c6   :  { %1979 = vmatprep.subr.bf16.mxu0 %v2939_v6 }
 0x7c9   :  { %1980 = vmatpush3.bf16.msra.mxu0 %v2077_v26 }
 0x7ca   :  { %1981 = vmatprep.subr.bf16.mxu0 %v2939_v6 }
 0x7cd   :  { %1982 = vmatpush3.bf16.msra.mxu0 %v2078_v27 }
 0x7ce   :  { %1983 = vmatprep.subr.bf16.mxu0 %v2939_v6 }
 0x7d1   :  { %1984 = vmatpush3.bf16.msra.mxu0 %v2079_v29 }
 0x7d2   :  { %1985 = vmatprep.subr.bf16.mxu0 %v2939_v6 }
 0x7d5   :  { %1986 = vmatpush3.bf16.msra.mxu0 %v2080_v30 }
 0x7d6   :  { %1987 = vmatprep.subr.bf16.mxu0 %v2939_v6 }
 0x7d9   :  { %1988 = vmatpush3.bf16.msra.mxu0 %v2081_v19 }
 0x88f   :  { %v1417_v58 = vpop.f32.mrb[44].mxu0  ;;  %v1458_v15 = vpop.f32.mrb[36].mxu1 }
 0x890   :  { %v1418_v59 = vadd.f32 %v1417_v58, %v2612_v7  ;;  %v1419_v20 = vpop.f32.mrb[45].mxu0  ;;  %v1971_v62 = vpop.f32.mrb[37].mxu1  ;;  %v1459_v14 = vadd.f32 %v1458_v15, %v2620_v61 }
 0x891   :  { %v1420_v63 = vadd.f32 %v1419_v20, %v2614_v11  ;;  %v1421_v16 = vpop.f32.mrb[46].mxu0  ;;  %v1461_v38 = vpop.f32.mrb[38].mxu1 }
 0x892   :  { %v1464_v24 = vadd.f32 %v1418_v59, %v2946_v4  ;;  %v1422_v55 = vpop.f32.mrb[47].mxu0  ;;  %v1972_v9 = vpop.f32.mrb[39].mxu1 }
 0x893   :  { %v1465_v12 = vadd.f32 %v1420_v63, %v2947_v18 }
 0x894   :  { %v1685_v22 = vmul.f32 -1.442695, %v1464_v24 }
 0x895   :  { %v1686_v6 = vmul.f32 -1.442695, %v1465_v12 }
 0x896   :  { %2152 = vpow2.f32 %v1685_v22 }
 0x897   :  { %2154 = vpow2.f32 %v1686_v6 }
 0x8a0   :  { %v2153_v35 = vpop.eup %2152 }
 0x8a1   :  { %v1472_v1 = vadd.f32 1.0, %v2153_v35  ;;  %v2155_v7 = vpop.eup %2154 }
 0x8a2   :  { %v1473_v23 = vadd.f32 1.0, %v2155_v7 }
 0x8a3   :  { %2156 = vrcp.f32 %v1472_v1 }
 0x8a4   :  { %2158 = vrcp.f32 %v1473_v23 }
 0x8ad   :  { %v2157_v11 = vpop.eup %2156 }
 0x8ae   :  { %v1478_v56 = vmul.f32 %v2157_v11, %v1459_v14  ;;  %v2159_v31 = vpop.eup %2158 }
 0x8af   :  { %v1481_v25 = vsub.f32 1.0, %v2159_v31  ;;  %v1483_v3 = vmul.f32 %v2159_v31, %v1378_v10 }
 0x8b0   :  { %v1479_v2 = vadd.f32 %v1478_v56, %v2948_v28 }
 0x8b2   :  { %2160 = vtanh.f32 %v1479_v2 }
 0x8bc   :  { %v2161_v5 = vpop.eup %2160 }
 0x8bd   :  { %v1482_v8 = vmul.f32 %v2161_v5, %v1481_v25 }
 0x8bf   :  { %v1484_v13 = vadd.f32 %v1483_v3, %v1482_v8 }
 0x8c1   :  { %v1489_v53 = vpack.c.bf16 %v1484_v13, %v1484_v13 }
 0x8c3   :  { %1990 = vmatmul.mubr.bf16.vlgmr.msra.gmra.mrb[48].mxu0 %v1489_v53 }
 0x996   :  { %v1595_v61 = vpop.f32.mrb[48].mxu0 }
 0x997   :  { %v1596_v33 = vadd.f32 %v1687_v32, %v1595_v61  ;;  %v1991_v34 = vpop.f32.mrb[49].mxu0 }
 0x998   :  { %v1598_v36 = vpop.f32.mrb[50].mxu0 }
 0x999   :  { %1601 = vst [vmem:[#allocation12] sm:$0xff] %v1596_v33  ;;  %v1992_v37 = vpop.f32.mrb[51].mxu0 }
 0x99a   :  { %2285 = shalt.err (!%p2282_p8)
}
 0x99b   :  { %s2286_s6 = scalar_lea.hbm %s2924_s7, 128 }
 0x99c   :  { %p2287_p9 = scmp.ne.s32.totalorder %s2924_s7, %s2286_s6  ;;  %p2290_p10 = scmp.lt.u32.totalorder %s2286_s6, %s2924_s7 }
 0x99e   :  { %p2292_p11 = pnand %p2290_p10, %p2287_p9 }
 0x9a0   :  { %2295 = shalt.err (!%p2292_p11)
}
 0x9a1   :  { %1611 = dma.vmem_to_hbm [thread:$0]  %s1609_s30, 128, %s2924_s7, [#allocation6]  }
 0x9a2   :  { %2302 = dma.done.wait [#allocation6], 128  }
 0x9a3   :  { %2303 = vsyncadd [#allocation6], 4294967168 }
 0x9a4   :  { %1615 = vsyncpa [#allocation5], 1 }
 0x9a5   :  { %1616 = vsyncpa [#allocation8], 1 }
 0x9a6   :  { %1617 = vsyncpa [#allocation11], 1 }
 0x9a7   :  { %1618 = vsyncpa [#allocation6], 1 }

</bundles_post_ra>
